<compile_context>
chip_gen: v7x
topology: tpu7x:2x2x1
jax: 0.10.0
libtpu: 0.0.40
codegen_flags: <defaults>
</compile_context>

<pallas_src>
import functools

import jax
import jax.numpy as jnp
from jax import lax
from jax.experimental import pallas as pl
from jax.experimental.pallas import tpu as pltpu


def _inception1_kernel(x_ref, w_ref, shift_ref, o_ref, xc_ref, acc_ref, *,
                       H, W, C, OC, ckernel, cstride, cpad,
                       pkernel, pstride, ppad, pad, OH, OW):
    # x_ref:     (1, H, W, C)            unpadded NHWC input, one image
    # w_ref:     (ckernel*ckernel, C, OC) per-tap conv weights (bf16), BN-scaled
    # shift_ref: (1, OC)                 folded BatchNorm shift (f32)
    # o_ref:     (1, OH*OW, OC + C)      conv || pool concatenated output
    # xc_ref:    (H+2*pad, W+2*pad, C)   shared zero-padded scratch (f32)
    # acc_ref:   (OH*OW, OC)             f32 conv accumulator
    Hp, Wp = H + 2 * pad, W + 2 * pad

    # ---- refresh only the zero border strips; interior is overwritten ----
    if pad > 0:
        zrow = jnp.zeros((pad, Wp, C), jnp.float32)
        zcol = jnp.zeros((H, pad, C), jnp.float32)
        xc_ref[:pad, :, :] = zrow
        xc_ref[pad + H:, :, :] = zrow
        xc_ref[pad:pad + H, :pad, :] = zcol
        xc_ref[pad:pad + H, pad + W:, :] = zcol
    xc_ref[pad:pad + H, pad:pad + W, :] = x_ref[0]

    def tap(r0, c0, stride):
        # (OH, OW, C) strided window read straight from the scratch ref; the
        # full padded image is never live in vregs.
        if stride == 1:
            return xc_ref[r0:r0 + OH, c0:c0 + OW, :]
        return xc_ref[pl.ds(r0, OH, stride=stride),
                      pl.ds(c0, OW, stride=stride), :]

    # ---- branch 1: conv = per-tap matmul accumulation (bf16 x bf16 -> f32) --
    first = True
    for kh in range(ckernel):                                  # static unroll
        for kw in range(ckernel):
            patch = tap(kh + pad - cpad, kw + pad - cpad, cstride)
            lhs = patch.reshape(OH * OW, C).astype(jnp.bfloat16)
            contrib = jnp.dot(lhs, w_ref[kh * ckernel + kw],
                              preferred_element_type=jnp.float32)
            if first:
                acc_ref[...] = contrib
                first = False
            else:
                acc_ref[...] += contrib
    conv = jnp.maximum(acc_ref[...] + shift_ref[...], 0.0)    # (OH*OW, OC) f32

    # ---- branch 2: max pool from the SAME zero-padded scratch; taps that can
    # touch padding are masked to -inf so zeros never win the max ----
    pooled = None
    for ph in range(pkernel):
        for pw in range(pkernel):
            row_lo, col_lo = ph - ppad, pw - ppad              # image-frame
            row_hi = (OH - 1) * pstride + row_lo
            col_hi = (OW - 1) * pstride + col_lo
            patch = tap(ph + pad - ppad, pw + pad - ppad, pstride)
            if row_lo < 0 or row_hi >= H or col_lo < 0 or col_hi >= W:
                rows = (lax.broadcasted_iota(jnp.int32, (OH, OW, C), 0)
                        * pstride + row_lo)
                cols = (lax.broadcasted_iota(jnp.int32, (OH, OW, C), 1)
                        * pstride + col_lo)
                valid = (rows >= 0) & (rows < H) & (cols >= 0) & (cols < W)
                patch = jnp.where(valid, patch, -jnp.inf)
            pooled = patch if pooled is None else jnp.maximum(pooled, patch)
    pooled = pooled.reshape(OH * OW, C)

    # ---- fused channel concat: one store of the combined output block ----
    o_ref[0] = jnp.concatenate([conv, pooled], axis=-1)        # (OH*OW, OC+C)


def _vmem_limit_bytes(per_step_bytes):
    try:
        cap = int(pltpu.get_tpu_info().vmem_capacity_bytes)
    except Exception:
        cap = 128 * 1024 * 1024
    # leave ~25% headroom for the runtime; never below the 32 MiB default.
    return int(min(max(4 * per_step_bytes, 32 << 20), (cap * 3) // 4))


def inception1_forward_nhwc(x_nhwc, w_hwio, bn_gamma, bn_beta, bn_mean, bn_var,
                            *, ckernel, cstride, cpad, pkernel, pstride, ppad,
                            eps=1e-5):
    N, H, W, C = x_nhwc.shape
    OC = w_hwio.shape[-1]

    OH = (H + 2 * cpad - ckernel) // cstride + 1
    OW = (W + 2 * cpad - ckernel) // cstride + 1
    OHp = (H + 2 * ppad - pkernel) // pstride + 1
    OWp = (W + 2 * ppad - pkernel) // pstride + 1
    assert (OH, OW) == (OHp, OWp), "branch spatial dims must match for concat"
    pad = max(cpad, ppad)                  # one shared zero-padded scratch

    # Fold BatchNorm (eval mode) into the conv weights + a shift vector.
    inv_std = 1.0 / jnp.sqrt(bn_var.astype(jnp.float32) + eps)
    scale = bn_gamma.astype(jnp.float32) * inv_std                      # (OC,)
    shift = (bn_beta.astype(jnp.float32)
             - bn_mean.astype(jnp.float32) * scale).reshape(1, OC)
    # Per-tap weight layout (KH*KW, C, OC); bf16 operands, f32 accumulation.
    w_taps = (w_hwio.astype(jnp.float32) * scale).reshape(
        ckernel * ckernel, C, OC).astype(jnp.bfloat16)

    TC = OC + C
    kernel = functools.partial(
        _inception1_kernel, H=H, W=W, C=C, OC=OC,
        ckernel=ckernel, cstride=cstride, cpad=cpad,
        pkernel=pkernel, pstride=pstride, ppad=ppad, pad=pad, OH=OH, OW=OW)

    per_step = (2 * H * W * C * 4                      # double-buffered input
                + 2 * OH * OW * TC * 4                 # double-buffered output
                + ckernel * ckernel * C * OC * 2 + OC * 4
                + (H + 2 * pad) * (W + 2 * pad) * C * 4
                + OH * OW * OC * 4)

    out = pl.pallas_call(
        kernel,
        out_shape=jax.ShapeDtypeStruct((N, OH * OW, TC), jnp.float32),
        grid=(N,),
        in_specs=[
            pl.BlockSpec((1, H, W, C), lambda n: (n, 0, 0, 0)),
            pl.BlockSpec((ckernel * ckernel, C, OC), lambda n: (0, 0, 0)),
            pl.BlockSpec((1, OC), lambda n: (0, 0)),
        ],
        out_specs=pl.BlockSpec((1, OH * OW, TC), lambda n: (n, 0, 0)),
        scratch_shapes=[
            pltpu.VMEM((H + 2 * pad, W + 2 * pad, C), jnp.float32),
            pltpu.VMEM((OH * OW, OC), jnp.float32),
        ],
        compiler_params=pltpu.CompilerParams(
            dimension_semantics=("parallel",),
            vmem_limit_bytes=_vmem_limit_bytes(per_step)),
    )(x_nhwc.astype(jnp.float32), w_taps, shift)

    return out.reshape(N, OH, OW, TC)      # free metadata reshape (NHWC)


def inception1_forward(x_nchw, w_hwio, bn_gamma, bn_beta, bn_mean, bn_var, *,
                       ckernel, cstride, cpad, pkernel, pstride, ppad,
                       eps=1e-5):
    # NCHW contract matching the PyTorch module.  Prefer the NHWC entry point
    # when callers can avoid these two whole-tensor HBM transposes.
    x = jnp.transpose(x_nchw, (0, 2, 3, 1))
    out = inception1_forward_nhwc(
        x, w_hwio, bn_gamma, bn_beta, bn_mean, bn_var,
        ckernel=ckernel, cstride=cstride, cpad=cpad,
        pkernel=pkernel, pstride=pstride, ppad=ppad, eps=eps)
    return jnp.transpose(out, (0, 3, 1, 2))   # (N, OC + C, OH, OW)


def _reference(x_nchw, w_hwio, gamma, beta, mean, var,
               ckernel, cstride, cpad, pkernel, pstride, ppad, eps=1e-5):
    x = jnp.transpose(x_nchw, (0, 2, 3, 1)).astype(jnp.float32)
    conv = lax.conv_general_dilated(
        x, w_hwio.astype(jnp.float32),
        window_strides=(cstride, cstride),
        padding=[(cpad, cpad), (cpad, cpad)],
        dimension_numbers=('NHWC', 'HWIO', 'NHWC'))
    inv_std = 1.0 / jnp.sqrt(var + eps)
    conv = jnp.maximum((conv - mean) * (gamma * inv_std) + beta, 0.0)
    pool = lax.reduce_window(
        x, -jnp.inf, lax.max,
        window_dimensions=(1, pkernel, pkernel, 1),
        window_strides=(1, pstride, pstride, 1),
        padding=[(0, 0), (ppad, ppad), (ppad, ppad), (0, 0)])
    return jnp.concatenate([jnp.transpose(conv, (0, 3, 1, 2)),
                            jnp.transpose(pool, (0, 3, 1, 2))], axis=1)


if __name__ == "__main__":
    # Small shapes consistent with the module.
    N, C, H, W = 2, 4, 16, 16
    OC = 8
    ckernel, cstride, cpad = 3, 2, 1
    pkernel, pstride, ppad = 3, 2, 1

    key = jax.random.PRNGKey(0)
    kx, kw = jax.random.split(key)
    x = jax.random.normal(kx, (N, C, H, W), dtype=jnp.float32)
    w = jax.random.normal(kw, (ckernel, ckernel, C, OC), dtype=jnp.float32) * 0.1

    # Deterministic BatchNorm (eval-mode) parameters.
    idx = jnp.arange(OC, dtype=jnp.float32)
    gamma = 1.0 + 0.1 * idx
    beta = 0.05 * idx
    mean = 0.01 * idx
    var = 1.0 + 0.02 * idx

    out = inception1_forward(
        x, w, gamma, beta, mean, var,
        ckernel=ckernel, cstride=cstride, cpad=cpad,
        pkernel=pkernel, pstride=pstride, ppad=ppad)
    out = jax.block_until_ready(out)

    ref = _reference(x, w, gamma, beta, mean, var,
                     ckernel, cstride, cpad, pkernel, pstride, ppad)
    assert out.shape == (N, OC + C, 8, 8), out.shape
    # bf16 matmul operands (f32 accumulation) -> relaxed tolerance.
    assert jnp.allclose(out, ref, atol=2e-2, rtol=2e-2), \
        float(jnp.max(jnp.abs(out - ref)))
    print("KERNEL_OK")
</pallas_src>

<mosaic_0001>
module attributes {stable_mosaic.version = 11 : i64} {
  func.func @_inception1_kernel(%arg0: i32, %arg1: memref<1x16x16x4xf32, #tpu.memory_space<vmem>>, %arg2: memref<9x4x8xbf16, #tpu.memory_space<vmem>>, %arg3: memref<1x8xf32, #tpu.memory_space<vmem>>, %arg4: memref<1x64x12xf32, #tpu.memory_space<vmem>>, %arg5: memref<18x18x4xf32, #tpu.memory_space<vmem>>, %arg6: memref<64x8xf32, #tpu.memory_space<vmem>>) attributes {dimension_semantics = [#tpu.dimension_semantics<parallel>], iteration_bounds = array<i64: 2>, scalar_prefetch = 0 : i64, scratch_operands = 2 : i64, tpu.core_type = #tpu.core_type<tc>, window_params = [{transform_indices = @transform_0, window_bounds = array<i64: 1, 16, 16, 4>}, {pipeline_mode = #tpu.pipeline_mode<synchronous>, transform_indices = @transform_1, window_bounds = array<i64: 9, 4, 8>}, {pipeline_mode = #tpu.pipeline_mode<synchronous>, transform_indices = @transform_2, window_bounds = array<i64: 1, 8>}, {transform_indices = @transform_3, window_bounds = array<i64: 1, 64, 12>}]} {
    %cst = arith.constant 0.000000e+00 : f32
    %0 = vector.broadcast %cst : f32 to vector<1x18x4xf32>
    %cst_0 = arith.constant 0.000000e+00 : f32
    %1 = vector.broadcast %cst_0 : f32 to vector<16x1x4xf32>
    %c0 = arith.constant 0 : index
    %c0_1 = arith.constant 0 : index
    %c0_2 = arith.constant 0 : index
    %2 = vector.load %arg5[%c0, %c0_1, %c0_2] : memref<18x18x4xf32, #tpu.memory_space<vmem>>, vector<1x18x4xf32>
    tpu.vector_store %arg5[%c0, %c0_1, %c0_2], %0 {strides = array<i32>} : memref<18x18x4xf32, #tpu.memory_space<vmem>>, vector<1x18x4xf32>,
    %c17 = arith.constant 17 : index
    %c0_3 = arith.constant 0 : index
    %c0_4 = arith.constant 0 : index
    %3 = vector.load %arg5[%c17, %c0_3, %c0_4] : memref<18x18x4xf32, #tpu.memory_space<vmem>>, vector<1x18x4xf32>
    tpu.vector_store %arg5[%c17, %c0_3, %c0_4], %0 {strides = array<i32>} : memref<18x18x4xf32, #tpu.memory_space<vmem>>, vector<1x18x4xf32>,
    %c1 = arith.constant 1 : index
    %c0_5 = arith.constant 0 : index
    %c0_6 = arith.constant 0 : index
    %4 = vector.load %arg5[%c1, %c0_5, %c0_6] : memref<18x18x4xf32, #tpu.memory_space<vmem>>, vector<16x1x4xf32>
    tpu.vector_store %arg5[%c1, %c0_5, %c0_6], %1 {strides = array<i32>} : memref<18x18x4xf32, #tpu.memory_space<vmem>>, vector<16x1x4xf32>,
    %c1_7 = arith.constant 1 : index
    %c17_8 = arith.constant 17 : index
    %c0_9 = arith.constant 0 : index
    %5 = vector.load %arg5[%c1_7, %c17_8, %c0_9] : memref<18x18x4xf32, #tpu.memory_space<vmem>>, vector<16x1x4xf32>
    tpu.vector_store %arg5[%c1_7, %c17_8, %c0_9], %1 {strides = array<i32>} : memref<18x18x4xf32, #tpu.memory_space<vmem>>, vector<16x1x4xf32>,
    %c0_10 = arith.constant 0 : index
    %c0_11 = arith.constant 0 : index
    %c0_12 = arith.constant 0 : index
    %c0_13 = arith.constant 0 : index
    %6 = vector.load %arg1[%c0_10, %c0_11, %c0_12, %c0_13] : memref<1x16x16x4xf32, #tpu.memory_space<vmem>>, vector<1x16x16x4xf32>
    %7 = vector.shape_cast %6 : vector<1x16x16x4xf32> to vector<16x16x4xf32>
    %c1_14 = arith.constant 1 : index
    %c1_15 = arith.constant 1 : index
    %c0_16 = arith.constant 0 : index
    %8 = vector.load %arg5[%c1_14, %c1_15, %c0_16] : memref<18x18x4xf32, #tpu.memory_space<vmem>>, vector<16x16x4xf32>
    tpu.vector_store %arg5[%c1_14, %c1_15, %c0_16], %7 {strides = array<i32>} : memref<18x18x4xf32, #tpu.memory_space<vmem>>, vector<16x16x4xf32>,
    %c0_17 = arith.constant 0 : index
    %c0_18 = arith.constant 0 : index
    %c0_19 = arith.constant 0 : index
    %9 = tpu.strided_load %arg5[%c0_17, %c0_18, %c0_19] {strides = array<i32: 2, 2, 1>} : memref<18x18x4xf32, #tpu.memory_space<vmem>>, vector<8x8x4xf32>
    %10 = vector.shape_cast %9 : vector<8x8x4xf32> to vector<64x4xf32>
    %11 = arith.truncf %10 : vector<64x4xf32> to vector<64x4xbf16>
    %c0_20 = arith.constant 0 : index
    %c0_21 = arith.constant 0 : index
    %c0_22 = arith.constant 0 : index
    %12 = vector.load %arg2[%c0_20, %c0_21, %c0_22] : memref<9x4x8xbf16, #tpu.memory_space<vmem>>, vector<1x4x8xbf16>
    %13 = vector.shape_cast %12 : vector<1x4x8xbf16> to vector<4x8xbf16>
    %cst_23 = arith.constant dense<0.000000e+00> : vector<64x8xf32>
    %14 = tpu.matmul %11, %13, %cst_23 {dimension_numbers = #tpu.dot_dimension_numbers<[1], [0], [0], [1], [0, 0, 1, 1], [], []>} : vector<64x4xbf16>, vector<4x8xbf16>, vector<64x8xf32> -> vector<64x8xf32>
    %c0_24 = arith.constant 0 : index
    %c0_25 = arith.constant 0 : index
    %15 = vector.load %arg6[%c0_24, %c0_25] : memref<64x8xf32, #tpu.memory_space<vmem>>, vector<64x8xf32>
    tpu.vector_store %arg6[%c0_24, %c0_25], %14 {strides = array<i32>} : memref<64x8xf32, #tpu.memory_space<vmem>>, vector<64x8xf32>,
    %c0_26 = arith.constant 0 : index
    %c1_27 = arith.constant 1 : index
    %c0_28 = arith.constant 0 : index
    %16 = tpu.strided_load %arg5[%c0_26, %c1_27, %c0_28] {strides = array<i32: 2, 2, 1>} : memref<18x18x4xf32, #tpu.memory_space<vmem>>, vector<8x8x4xf32>
    %17 = vector.shape_cast %16 : vector<8x8x4xf32> to vector<64x4xf32>
    %18 = arith.truncf %17 : vector<64x4xf32> to vector<64x4xbf16>
    %c1_29 = arith.constant 1 : index
    %c0_30 = arith.constant 0 : index
    %c0_31 = arith.constant 0 : index
    %19 = vector.load %arg2[%c1_29, %c0_30, %c0_31] : memref<9x4x8xbf16, #tpu.memory_space<vmem>>, vector<1x4x8xbf16>
    %20 = vector.shape_cast %19 : vector<1x4x8xbf16> to vector<4x8xbf16>
    %cst_32 = arith.constant dense<0.000000e+00> : vector<64x8xf32>
    %21 = tpu.matmul %18, %20, %cst_32 {dimension_numbers = #tpu.dot_dimension_numbers<[1], [0], [0], [1], [0, 0, 1, 1], [], []>} : vector<64x4xbf16>, vector<4x8xbf16>, vector<64x8xf32> -> vector<64x8xf32>
    %c0_33 = arith.constant 0 : index
    %c0_34 = arith.constant 0 : index
    %22 = vector.load %arg6[%c0_33, %c0_34] : memref<64x8xf32, #tpu.memory_space<vmem>>, vector<64x8xf32>
    %23 = arith.addf %22, %21 : vector<64x8xf32>
    %c0_35 = arith.constant 0 : index
    %c0_36 = arith.constant 0 : index
    %24 = vector.load %arg6[%c0_35, %c0_36] : memref<64x8xf32, #tpu.memory_space<vmem>>, vector<64x8xf32>
    tpu.vector_store %arg6[%c0_35, %c0_36], %23 {strides = array<i32>} : memref<64x8xf32, #tpu.memory_space<vmem>>, vector<64x8xf32>,
    %c0_37 = arith.constant 0 : index
    %c2 = arith.constant 2 : index
    %c0_38 = arith.constant 0 : index
    %25 = tpu.strided_load %arg5[%c0_37, %c2, %c0_38] {strides = array<i32: 2, 2, 1>} : memref<18x18x4xf32, #tpu.memory_space<vmem>>, vector<8x8x4xf32>
    %26 = vector.shape_cast %25 : vector<8x8x4xf32> to vector<64x4xf32>
    %27 = arith.truncf %26 : vector<64x4xf32> to vector<64x4xbf16>
    %c2_39 = arith.constant 2 : index
    %c0_40 = arith.constant 0 : index
    %c0_41 = arith.constant 0 : index
    %28 = vector.load %arg2[%c2_39, %c0_40, %c0_41] : memref<9x4x8xbf16, #tpu.memory_space<vmem>>, vector<1x4x8xbf16>
    %29 = vector.shape_cast %28 : vector<1x4x8xbf16> to vector<4x8xbf16>
    %cst_42 = arith.constant dense<0.000000e+00> : vector<64x8xf32>
    %30 = tpu.matmul %27, %29, %cst_42 {dimension_numbers = #tpu.dot_dimension_numbers<[1], [0], [0], [1], [0, 0, 1, 1], [], []>} : vector<64x4xbf16>, vector<4x8xbf16>, vector<64x8xf32> -> vector<64x8xf32>
    %c0_43 = arith.constant 0 : index
    %c0_44 = arith.constant 0 : index
    %31 = vector.load %arg6[%c0_43, %c0_44] : memref<64x8xf32, #tpu.memory_space<vmem>>, vector<64x8xf32>
    %32 = arith.addf %31, %30 : vector<64x8xf32>
    %c0_45 = arith.constant 0 : index
    %c0_46 = arith.constant 0 : index
    %33 = vector.load %arg6[%c0_45, %c0_46] : memref<64x8xf32, #tpu.memory_space<vmem>>, vector<64x8xf32>
    tpu.vector_store %arg6[%c0_45, %c0_46], %32 {strides = array<i32>} : memref<64x8xf32, #tpu.memory_space<vmem>>, vector<64x8xf32>,
    %c1_47 = arith.constant 1 : index
    %c0_48 = arith.constant 0 : index
    %c0_49 = arith.constant 0 : index
    %34 = tpu.strided_load %arg5[%c1_47, %c0_48, %c0_49] {strides = array<i32: 2, 2, 1>} : memref<18x18x4xf32, #tpu.memory_space<vmem>>, vector<8x8x4xf32>
    %35 = vector.shape_cast %34 : vector<8x8x4xf32> to vector<64x4xf32>
    %36 = arith.truncf %35 : vector<64x4xf32> to vector<64x4xbf16>
    %c3 = arith.constant 3 : index
    %c0_50 = arith.constant 0 : index
    %c0_51 = arith.constant 0 : index
    %37 = vector.load %arg2[%c3, %c0_50, %c0_51] : memref<9x4x8xbf16, #tpu.memory_space<vmem>>, vector<1x4x8xbf16>
    %38 = vector.shape_cast %37 : vector<1x4x8xbf16> to vector<4x8xbf16>
    %cst_52 = arith.constant dense<0.000000e+00> : vector<64x8xf32>
    %39 = tpu.matmul %36, %38, %cst_52 {dimension_numbers = #tpu.dot_dimension_numbers<[1], [0], [0], [1], [0, 0, 1, 1], [], []>} : vector<64x4xbf16>, vector<4x8xbf16>, vector<64x8xf32> -> vector<64x8xf32>
    %c0_53 = arith.constant 0 : index
    %c0_54 = arith.constant 0 : index
    %40 = vector.load %arg6[%c0_53, %c0_54] : memref<64x8xf32, #tpu.memory_space<vmem>>, vector<64x8xf32>
    %41 = arith.addf %40, %39 : vector<64x8xf32>
    %c0_55 = arith.constant 0 : index
    %c0_56 = arith.constant 0 : index
    %42 = vector.load %arg6[%c0_55, %c0_56] : memref<64x8xf32, #tpu.memory_space<vmem>>, vector<64x8xf32>
    tpu.vector_store %arg6[%c0_55, %c0_56], %41 {strides = array<i32>} : memref<64x8xf32, #tpu.memory_space<vmem>>, vector<64x8xf32>,
    %c1_57 = arith.constant 1 : index
    %c1_58 = arith.constant 1 : index
    %c0_59 = arith.constant 0 : index
    %43 = tpu.strided_load %arg5[%c1_57, %c1_58, %c0_59] {strides = array<i32: 2, 2, 1>} : memref<18x18x4xf32, #tpu.memory_space<vmem>>, vector<8x8x4xf32>
    %44 = vector.shape_cast %43 : vector<8x8x4xf32> to vector<64x4xf32>
    %45 = arith.truncf %44 : vector<64x4xf32> to vector<64x4xbf16>
    %c4 = arith.constant 4 : index
    %c0_60 = arith.constant 0 : index
    %c0_61 = arith.constant 0 : index
    %46 = vector.load %arg2[%c4, %c0_60, %c0_61] : memref<9x4x8xbf16, #tpu.memory_space<vmem>>, vector<1x4x8xbf16>
    %47 = vector.shape_cast %46 : vector<1x4x8xbf16> to vector<4x8xbf16>
    %cst_62 = arith.constant dense<0.000000e+00> : vector<64x8xf32>
    %48 = tpu.matmul %45, %47, %cst_62 {dimension_numbers = #tpu.dot_dimension_numbers<[1], [0], [0], [1], [0, 0, 1, 1], [], []>} : vector<64x4xbf16>, vector<4x8xbf16>, vector<64x8xf32> -> vector<64x8xf32>
    %c0_63 = arith.constant 0 : index
    %c0_64 = arith.constant 0 : index
    %49 = vector.load %arg6[%c0_63, %c0_64] : memref<64x8xf32, #tpu.memory_space<vmem>>, vector<64x8xf32>
    %50 = arith.addf %49, %48 : vector<64x8xf32>
    %c0_65 = arith.constant 0 : index
    %c0_66 = arith.constant 0 : index
    %51 = vector.load %arg6[%c0_65, %c0_66] : memref<64x8xf32, #tpu.memory_space<vmem>>, vector<64x8xf32>
    tpu.vector_store %arg6[%c0_65, %c0_66], %50 {strides = array<i32>} : memref<64x8xf32, #tpu.memory_space<vmem>>, vector<64x8xf32>,
    %c1_67 = arith.constant 1 : index
    %c2_68 = arith.constant 2 : index
    %c0_69 = arith.constant 0 : index
    %52 = tpu.strided_load %arg5[%c1_67, %c2_68, %c0_69] {strides = array<i32: 2, 2, 1>} : memref<18x18x4xf32, #tpu.memory_space<vmem>>, vector<8x8x4xf32>
    %53 = vector.shape_cast %52 : vector<8x8x4xf32> to vector<64x4xf32>
    %54 = arith.truncf %53 : vector<64x4xf32> to vector<64x4xbf16>
    %c5 = arith.constant 5 : index
    %c0_70 = arith.constant 0 : index
    %c0_71 = arith.constant 0 : index
    %55 = vector.load %arg2[%c5, %c0_70, %c0_71] : memref<9x4x8xbf16, #tpu.memory_space<vmem>>, vector<1x4x8xbf16>
    %56 = vector.shape_cast %55 : vector<1x4x8xbf16> to vector<4x8xbf16>
    %cst_72 = arith.constant dense<0.000000e+00> : vector<64x8xf32>
    %57 = tpu.matmul %54, %56, %cst_72 {dimension_numbers = #tpu.dot_dimension_numbers<[1], [0], [0], [1], [0, 0, 1, 1], [], []>} : vector<64x4xbf16>, vector<4x8xbf16>, vector<64x8xf32> -> vector<64x8xf32>
    %c0_73 = arith.constant 0 : index
    %c0_74 = arith.constant 0 : index
    %58 = vector.load %arg6[%c0_73, %c0_74] : memref<64x8xf32, #tpu.memory_space<vmem>>, vector<64x8xf32>
    %59 = arith.addf %58, %57 : vector<64x8xf32>
    %c0_75 = arith.constant 0 : index
    %c0_76 = arith.constant 0 : index
    %60 = vector.load %arg6[%c0_75, %c0_76] : memref<64x8xf32, #tpu.memory_space<vmem>>, vector<64x8xf32>
    tpu.vector_store %arg6[%c0_75, %c0_76], %59 {strides = array<i32>} : memref<64x8xf32, #tpu.memory_space<vmem>>, vector<64x8xf32>,
    %c2_77 = arith.constant 2 : index
    %c0_78 = arith.constant 0 : index
    %c0_79 = arith.constant 0 : index
    %61 = tpu.strided_load %arg5[%c2_77, %c0_78, %c0_79] {strides = array<i32: 2, 2, 1>} : memref<18x18x4xf32, #tpu.memory_space<vmem>>, vector<8x8x4xf32>
    %62 = vector.shape_cast %61 : vector<8x8x4xf32> to vector<64x4xf32>
    %63 = arith.truncf %62 : vector<64x4xf32> to vector<64x4xbf16>
    %c6 = arith.constant 6 : index
    %c0_80 = arith.constant 0 : index
    %c0_81 = arith.constant 0 : index
    %64 = vector.load %arg2[%c6, %c0_80, %c0_81] : memref<9x4x8xbf16, #tpu.memory_space<vmem>>, vector<1x4x8xbf16>
    %65 = vector.shape_cast %64 : vector<1x4x8xbf16> to vector<4x8xbf16>
    %cst_82 = arith.constant dense<0.000000e+00> : vector<64x8xf32>
    %66 = tpu.matmul %63, %65, %cst_82 {dimension_numbers = #tpu.dot_dimension_numbers<[1], [0], [0], [1], [0, 0, 1, 1], [], []>} : vector<64x4xbf16>, vector<4x8xbf16>, vector<64x8xf32> -> vector<64x8xf32>
    %c0_83 = arith.constant 0 : index
    %c0_84 = arith.constant 0 : index
    %67 = vector.load %arg6[%c0_83, %c0_84] : memref<64x8xf32, #tpu.memory_space<vmem>>, vector<64x8xf32>
    %68 = arith.addf %67, %66 : vector<64x8xf32>
    %c0_85 = arith.constant 0 : index
    %c0_86 = arith.constant 0 : index
    %69 = vector.load %arg6[%c0_85, %c0_86] : memref<64x8xf32, #tpu.memory_space<vmem>>, vector<64x8xf32>
    tpu.vector_store %arg6[%c0_85, %c0_86], %68 {strides = array<i32>} : memref<64x8xf32, #tpu.memory_space<vmem>>, vector<64x8xf32>,
    %c2_87 = arith.constant 2 : index
    %c1_88 = arith.constant 1 : index
    %c0_89 = arith.constant 0 : index
    %70 = tpu.strided_load %arg5[%c2_87, %c1_88, %c0_89] {strides = array<i32: 2, 2, 1>} : memref<18x18x4xf32, #tpu.memory_space<vmem>>, vector<8x8x4xf32>
    %71 = vector.shape_cast %70 : vector<8x8x4xf32> to vector<64x4xf32>
    %72 = arith.truncf %71 : vector<64x4xf32> to vector<64x4xbf16>
    %c7 = arith.constant 7 : index
    %c0_90 = arith.constant 0 : index
    %c0_91 = arith.constant 0 : index
    %73 = vector.load %arg2[%c7, %c0_90, %c0_91] : memref<9x4x8xbf16, #tpu.memory_space<vmem>>, vector<1x4x8xbf16>
    %74 = vector.shape_cast %73 : vector<1x4x8xbf16> to vector<4x8xbf16>
    %cst_92 = arith.constant dense<0.000000e+00> : vector<64x8xf32>
    %75 = tpu.matmul %72, %74, %cst_92 {dimension_numbers = #tpu.dot_dimension_numbers<[1], [0], [0], [1], [0, 0, 1, 1], [], []>} : vector<64x4xbf16>, vector<4x8xbf16>, vector<64x8xf32> -> vector<64x8xf32>
    %c0_93 = arith.constant 0 : index
    %c0_94 = arith.constant 0 : index
    %76 = vector.load %arg6[%c0_93, %c0_94] : memref<64x8xf32, #tpu.memory_space<vmem>>, vector<64x8xf32>
    %77 = arith.addf %76, %75 : vector<64x8xf32>
    %c0_95 = arith.constant 0 : index
    %c0_96 = arith.constant 0 : index
    %78 = vector.load %arg6[%c0_95, %c0_96] : memref<64x8xf32, #tpu.memory_space<vmem>>, vector<64x8xf32>
    tpu.vector_store %arg6[%c0_95, %c0_96], %77 {strides = array<i32>} : memref<64x8xf32, #tpu.memory_space<vmem>>, vector<64x8xf32>,
    %c2_97 = arith.constant 2 : index
    %c2_98 = arith.constant 2 : index
    %c0_99 = arith.constant 0 : index
    %79 = tpu.strided_load %arg5[%c2_97, %c2_98, %c0_99] {strides = array<i32: 2, 2, 1>} : memref<18x18x4xf32, #tpu.memory_space<vmem>>, vector<8x8x4xf32>
    %80 = vector.shape_cast %79 : vector<8x8x4xf32> to vector<64x4xf32>
    %81 = arith.truncf %80 : vector<64x4xf32> to vector<64x4xbf16>
    %c8 = arith.constant 8 : index
    %c0_100 = arith.constant 0 : index
    %c0_101 = arith.constant 0 : index
    %82 = vector.load %arg2[%c8, %c0_100, %c0_101] : memref<9x4x8xbf16, #tpu.memory_space<vmem>>, vector<1x4x8xbf16>
    %83 = vector.shape_cast %82 : vector<1x4x8xbf16> to vector<4x8xbf16>
    %cst_102 = arith.constant dense<0.000000e+00> : vector<64x8xf32>
    %84 = tpu.matmul %81, %83, %cst_102 {dimension_numbers = #tpu.dot_dimension_numbers<[1], [0], [0], [1], [0, 0, 1, 1], [], []>} : vector<64x4xbf16>, vector<4x8xbf16>, vector<64x8xf32> -> vector<64x8xf32>
    %c0_103 = arith.constant 0 : index
    %c0_104 = arith.constant 0 : index
    %85 = vector.load %arg6[%c0_103, %c0_104] : memref<64x8xf32, #tpu.memory_space<vmem>>, vector<64x8xf32>
    %86 = arith.addf %85, %84 : vector<64x8xf32>
    %c0_105 = arith.constant 0 : index
    %c0_106 = arith.constant 0 : index
    %87 = vector.load %arg6[%c0_105, %c0_106] : memref<64x8xf32, #tpu.memory_space<vmem>>, vector<64x8xf32>
    tpu.vector_store %arg6[%c0_105, %c0_106], %86 {strides = array<i32>} : memref<64x8xf32, #tpu.memory_space<vmem>>, vector<64x8xf32>,
    %c0_107 = arith.constant 0 : index
    %c0_108 = arith.constant 0 : index
    %88 = vector.load %arg6[%c0_107, %c0_108] : memref<64x8xf32, #tpu.memory_space<vmem>>, vector<64x8xf32>
    %c0_109 = arith.constant 0 : index
    %c0_110 = arith.constant 0 : index
    %89 = vector.load %arg3[%c0_109, %c0_110] : memref<1x8xf32, #tpu.memory_space<vmem>>, vector<1x8xf32>
    %90 = vector.broadcast %89 : vector<1x8xf32> to vector<64x8xf32>
    %91 = arith.addf %88, %90 : vector<64x8xf32>
    %cst_111 = arith.constant 0.000000e+00 : f32
    %92 = vector.broadcast %cst_111 : f32 to vector<64x8xf32>
    %93 = arith.maximumf %91, %92 : vector<64x8xf32>
    %c0_112 = arith.constant 0 : index
    %c0_113 = arith.constant 0 : index
    %c0_114 = arith.constant 0 : index
    %94 = tpu.strided_load %arg5[%c0_112, %c0_113, %c0_114] {strides = array<i32: 2, 2, 1>} : memref<18x18x4xf32, #tpu.memory_space<vmem>>, vector<8x8x4xf32>
    %95 = tpu.iota {dimensions = array<i32: 0>} : vector<8x8x4xi32>
    %c2_i32 = arith.constant 2 : i32
    %96 = vector.broadcast %c2_i32 : i32 to vector<8x8x4xi32>
    %97 = arith.muli %95, %96 : vector<8x8x4xi32>
    %c-1_i32 = arith.constant -1 : i32
    %98 = vector.broadcast %c-1_i32 : i32 to vector<8x8x4xi32>
    %99 = arith.addi %97, %98 : vector<8x8x4xi32>
    %100 = tpu.iota {dimensions = array<i32: 1>} : vector<8x8x4xi32>
    %c2_i32_115 = arith.constant 2 : i32
    %101 = vector.broadcast %c2_i32_115 : i32 to vector<8x8x4xi32>
    %102 = arith.muli %100, %101 : vector<8x8x4xi32>
    %c-1_i32_116 = arith.constant -1 : i32
    %103 = vector.broadcast %c-1_i32_116 : i32 to vector<8x8x4xi32>
    %104 = arith.addi %102, %103 : vector<8x8x4xi32>
    %c0_i32 = arith.constant 0 : i32
    %105 = vector.broadcast %c0_i32 : i32 to vector<8x8x4xi32>
    %106 = arith.cmpi sge, %99, %105 : vector<8x8x4xi32>
    %c16_i32 = arith.constant 16 : i32
    %107 = vector.broadcast %c16_i32 : i32 to vector<8x8x4xi32>
    %108 = arith.cmpi slt, %99, %107 : vector<8x8x4xi32>
    %109 = arith.andi %106, %108 : vector<8x8x4xi1>
    %c0_i32_117 = arith.constant 0 : i32
    %110 = vector.broadcast %c0_i32_117 : i32 to vector<8x8x4xi32>
    %111 = arith.cmpi sge, %104, %110 : vector<8x8x4xi32>
    %112 = arith.andi %109, %111 : vector<8x8x4xi1>
    %c16_i32_118 = arith.constant 16 : i32
    %113 = vector.broadcast %c16_i32_118 : i32 to vector<8x8x4xi32>
    %114 = arith.cmpi slt, %104, %113 : vector<8x8x4xi32>
    %115 = arith.andi %112, %114 : vector<8x8x4xi1>
    %cst_119 = arith.constant 0xFF800000 : f32
    %116 = vector.broadcast %cst_119 : f32 to vector<8x8x4xf32>
    %117 = arith.select %115, %94, %116 : vector<8x8x4xi1>, vector<8x8x4xf32>
    %c0_120 = arith.constant 0 : index
    %c1_121 = arith.constant 1 : index
    %c0_122 = arith.constant 0 : index
    %118 = tpu.strided_load %arg5[%c0_120, %c1_121, %c0_122] {strides = array<i32: 2, 2, 1>} : memref<18x18x4xf32, #tpu.memory_space<vmem>>, vector<8x8x4xf32>
    %119 = tpu.iota {dimensions = array<i32: 0>} : vector<8x8x4xi32>
    %c2_i32_123 = arith.constant 2 : i32
    %120 = vector.broadcast %c2_i32_123 : i32 to vector<8x8x4xi32>
    %121 = arith.muli %119, %120 : vector<8x8x4xi32>
    %c-1_i32_124 = arith.constant -1 : i32
    %122 = vector.broadcast %c-1_i32_124 : i32 to vector<8x8x4xi32>
    %123 = arith.addi %121, %122 : vector<8x8x4xi32>
    %124 = tpu.iota {dimensions = array<i32: 1>} : vector<8x8x4xi32>
    %c2_i32_125 = arith.constant 2 : i32
    %125 = vector.broadcast %c2_i32_125 : i32 to vector<8x8x4xi32>
    %126 = arith.muli %124, %125 : vector<8x8x4xi32>
    %c0_i32_126 = arith.constant 0 : i32
    %127 = vector.broadcast %c0_i32_126 : i32 to vector<8x8x4xi32>
    %128 = arith.addi %126, %127 : vector<8x8x4xi32>
    %c0_i32_127 = arith.constant 0 : i32
    %129 = vector.broadcast %c0_i32_127 : i32 to vector<8x8x4xi32>
    %130 = arith.cmpi sge, %123, %129 : vector<8x8x4xi32>
    %c16_i32_128 = arith.constant 16 : i32
    %131 = vector.broadcast %c16_i32_128 : i32 to vector<8x8x4xi32>
    %132 = arith.cmpi slt, %123, %131 : vector<8x8x4xi32>
    %133 = arith.andi %130, %132 : vector<8x8x4xi1>
    %c0_i32_129 = arith.constant 0 : i32
    %134 = vector.broadcast %c0_i32_129 : i32 to vector<8x8x4xi32>
    %135 = arith.cmpi sge, %128, %134 : vector<8x8x4xi32>
    %136 = arith.andi %133, %135 : vector<8x8x4xi1>
    %c16_i32_130 = arith.constant 16 : i32
    %137 = vector.broadcast %c16_i32_130 : i32 to vector<8x8x4xi32>
    %138 = arith.cmpi slt, %128, %137 : vector<8x8x4xi32>
    %139 = arith.andi %136, %138 : vector<8x8x4xi1>
    %cst_131 = arith.constant 0xFF800000 : f32
    %140 = vector.broadcast %cst_131 : f32 to vector<8x8x4xf32>
    %141 = arith.select %139, %118, %140 : vector<8x8x4xi1>, vector<8x8x4xf32>
    %142 = arith.maximumf %117, %141 : vector<8x8x4xf32>
    %c0_132 = arith.constant 0 : index
    %c2_133 = arith.constant 2 : index
    %c0_134 = arith.constant 0 : index
    %143 = tpu.strided_load %arg5[%c0_132, %c2_133, %c0_134] {strides = array<i32: 2, 2, 1>} : memref<18x18x4xf32, #tpu.memory_space<vmem>>, vector<8x8x4xf32>
    %144 = tpu.iota {dimensions = array<i32: 0>} : vector<8x8x4xi32>
    %c2_i32_135 = arith.constant 2 : i32
    %145 = vector.broadcast %c2_i32_135 : i32 to vector<8x8x4xi32>
    %146 = arith.muli %144, %145 : vector<8x8x4xi32>
    %c-1_i32_136 = arith.constant -1 : i32
    %147 = vector.broadcast %c-1_i32_136 : i32 to vector<8x8x4xi32>
    %148 = arith.addi %146, %147 : vector<8x8x4xi32>
    %149 = tpu.iota {dimensions = array<i32: 1>} : vector<8x8x4xi32>
    %c2_i32_137 = arith.constant 2 : i32
    %150 = vector.broadcast %c2_i32_137 : i32 to vector<8x8x4xi32>
    %151 = arith.muli %149, %150 : vector<8x8x4xi32>
    %c1_i32 = arith.constant 1 : i32
    %152 = vector.broadcast %c1_i32 : i32 to vector<8x8x4xi32>
    %153 = arith.addi %151, %152 : vector<8x8x4xi32>
    %c0_i32_138 = arith.constant 0 : i32
    %154 = vector.broadcast %c0_i32_138 : i32 to vector<8x8x4xi32>
    %155 = arith.cmpi sge, %148, %154 : vector<8x8x4xi32>
    %c16_i32_139 = arith.constant 16 : i32
    %156 = vector.broadcast %c16_i32_139 : i32 to vector<8x8x4xi32>
    %157 = arith.cmpi slt, %148, %156 : vector<8x8x4xi32>
    %158 = arith.andi %155, %157 : vector<8x8x4xi1>
    %c0_i32_140 = arith.constant 0 : i32
    %159 = vector.broadcast %c0_i32_140 : i32 to vector<8x8x4xi32>
    %160 = arith.cmpi sge, %153, %159 : vector<8x8x4xi32>
    %161 = arith.andi %158, %160 : vector<8x8x4xi1>
    %c16_i32_141 = arith.constant 16 : i32
    %162 = vector.broadcast %c16_i32_141 : i32 to vector<8x8x4xi32>
    %163 = arith.cmpi slt, %153, %162 : vector<8x8x4xi32>
    %164 = arith.andi %161, %163 : vector<8x8x4xi1>
    %cst_142 = arith.constant 0xFF800000 : f32
    %165 = vector.broadcast %cst_142 : f32 to vector<8x8x4xf32>
    %166 = arith.select %164, %143, %165 : vector<8x8x4xi1>, vector<8x8x4xf32>
    %167 = arith.maximumf %142, %166 : vector<8x8x4xf32>
    %c1_143 = arith.constant 1 : index
    %c0_144 = arith.constant 0 : index
    %c0_145 = arith.constant 0 : index
    %168 = tpu.strided_load %arg5[%c1_143, %c0_144, %c0_145] {strides = array<i32: 2, 2, 1>} : memref<18x18x4xf32, #tpu.memory_space<vmem>>, vector<8x8x4xf32>
    %169 = tpu.iota {dimensions = array<i32: 0>} : vector<8x8x4xi32>
    %c2_i32_146 = arith.constant 2 : i32
    %170 = vector.broadcast %c2_i32_146 : i32 to vector<8x8x4xi32>
    %171 = arith.muli %169, %170 : vector<8x8x4xi32>
    %c0_i32_147 = arith.constant 0 : i32
    %172 = vector.broadcast %c0_i32_147 : i32 to vector<8x8x4xi32>
    %173 = arith.addi %171, %172 : vector<8x8x4xi32>
    %174 = tpu.iota {dimensions = array<i32: 1>} : vector<8x8x4xi32>
    %c2_i32_148 = arith.constant 2 : i32
    %175 = vector.broadcast %c2_i32_148 : i32 to vector<8x8x4xi32>
    %176 = arith.muli %174, %175 : vector<8x8x4xi32>
    %c-1_i32_149 = arith.constant -1 : i32
    %177 = vector.broadcast %c-1_i32_149 : i32 to vector<8x8x4xi32>
    %178 = arith.addi %176, %177 : vector<8x8x4xi32>
    %c0_i32_150 = arith.constant 0 : i32
    %179 = vector.broadcast %c0_i32_150 : i32 to vector<8x8x4xi32>
    %180 = arith.cmpi sge, %173, %179 : vector<8x8x4xi32>
    %c16_i32_151 = arith.constant 16 : i32
    %181 = vector.broadcast %c16_i32_151 : i32 to vector<8x8x4xi32>
    %182 = arith.cmpi slt, %173, %181 : vector<8x8x4xi32>
    %183 = arith.andi %180, %182 : vector<8x8x4xi1>
    %c0_i32_152 = arith.constant 0 : i32
    %184 = vector.broadcast %c0_i32_152 : i32 to vector<8x8x4xi32>
    %185 = arith.cmpi sge, %178, %184 : vector<8x8x4xi32>
    %186 = arith.andi %183, %185 : vector<8x8x4xi1>
    %c16_i32_153 = arith.constant 16 : i32
    %187 = vector.broadcast %c16_i32_153 : i32 to vector<8x8x4xi32>
    %188 = arith.cmpi slt, %178, %187 : vector<8x8x4xi32>
    %189 = arith.andi %186, %188 : vector<8x8x4xi1>
    %cst_154 = arith.constant 0xFF800000 : f32
    %190 = vector.broadcast %cst_154 : f32 to vector<8x8x4xf32>
    %191 = arith.select %189, %168, %190 : vector<8x8x4xi1>, vector<8x8x4xf32>
    %192 = arith.maximumf %167, %191 : vector<8x8x4xf32>
    %c1_155 = arith.constant 1 : index
    %c1_156 = arith.constant 1 : index
    %c0_157 = arith.constant 0 : index
    %193 = tpu.strided_load %arg5[%c1_155, %c1_156, %c0_157] {strides = array<i32: 2, 2, 1>} : memref<18x18x4xf32, #tpu.memory_space<vmem>>, vector<8x8x4xf32>
    %194 = arith.maximumf %192, %193 : vector<8x8x4xf32>
    %c1_158 = arith.constant 1 : index
    %c2_159 = arith.constant 2 : index
    %c0_160 = arith.constant 0 : index
    %195 = tpu.strided_load %arg5[%c1_158, %c2_159, %c0_160] {strides = array<i32: 2, 2, 1>} : memref<18x18x4xf32, #tpu.memory_space<vmem>>, vector<8x8x4xf32>
    %196 = arith.maximumf %194, %195 : vector<8x8x4xf32>
    %c2_161 = arith.constant 2 : index
    %c0_162 = arith.constant 0 : index
    %c0_163 = arith.constant 0 : index
    %197 = tpu.strided_load %arg5[%c2_161, %c0_162, %c0_163] {strides = array<i32: 2, 2, 1>} : memref<18x18x4xf32, #tpu.memory_space<vmem>>, vector<8x8x4xf32>
    %198 = tpu.iota {dimensions = array<i32: 0>} : vector<8x8x4xi32>
    %c2_i32_164 = arith.constant 2 : i32
    %199 = vector.broadcast %c2_i32_164 : i32 to vector<8x8x4xi32>
    %200 = arith.muli %198, %199 : vector<8x8x4xi32>
    %c1_i32_165 = arith.constant 1 : i32
    %201 = vector.broadcast %c1_i32_165 : i32 to vector<8x8x4xi32>
    %202 = arith.addi %200, %201 : vector<8x8x4xi32>
    %203 = tpu.iota {dimensions = array<i32: 1>} : vector<8x8x4xi32>
    %c2_i32_166 = arith.constant 2 : i32
    %204 = vector.broadcast %c2_i32_166 : i32 to vector<8x8x4xi32>
    %205 = arith.muli %203, %204 : vector<8x8x4xi32>
    %c-1_i32_167 = arith.constant -1 : i32
    %206 = vector.broadcast %c-1_i32_167 : i32 to vector<8x8x4xi32>
    %207 = arith.addi %205, %206 : vector<8x8x4xi32>
    %c0_i32_168 = arith.constant 0 : i32
    %208 = vector.broadcast %c0_i32_168 : i32 to vector<8x8x4xi32>
    %209 = arith.cmpi sge, %202, %208 : vector<8x8x4xi32>
    %c16_i32_169 = arith.constant 16 : i32
    %210 = vector.broadcast %c16_i32_169 : i32 to vector<8x8x4xi32>
    %211 = arith.cmpi slt, %202, %210 : vector<8x8x4xi32>
    %212 = arith.andi %209, %211 : vector<8x8x4xi1>
    %c0_i32_170 = arith.constant 0 : i32
    %213 = vector.broadcast %c0_i32_170 : i32 to vector<8x8x4xi32>
    %214 = arith.cmpi sge, %207, %213 : vector<8x8x4xi32>
    %215 = arith.andi %212, %214 : vector<8x8x4xi1>
    %c16_i32_171 = arith.constant 16 : i32
    %216 = vector.broadcast %c16_i32_171 : i32 to vector<8x8x4xi32>
    %217 = arith.cmpi slt, %207, %216 : vector<8x8x4xi32>
    %218 = arith.andi %215, %217 : vector<8x8x4xi1>
    %cst_172 = arith.constant 0xFF800000 : f32
    %219 = vector.broadcast %cst_172 : f32 to vector<8x8x4xf32>
    %220 = arith.select %218, %197, %219 : vector<8x8x4xi1>, vector<8x8x4xf32>
    %221 = arith.maximumf %196, %220 : vector<8x8x4xf32>
    %c2_173 = arith.constant 2 : index
    %c1_174 = arith.constant 1 : index
    %c0_175 = arith.constant 0 : index
    %222 = tpu.strided_load %arg5[%c2_173, %c1_174, %c0_175] {strides = array<i32: 2, 2, 1>} : memref<18x18x4xf32, #tpu.memory_space<vmem>>, vector<8x8x4xf32>
    %223 = arith.maximumf %221, %222 : vector<8x8x4xf32>
    %c2_176 = arith.constant 2 : index
    %c2_177 = arith.constant 2 : index
    %c0_178 = arith.constant 0 : index
    %224 = tpu.strided_load %arg5[%c2_176, %c2_177, %c0_178] {strides = array<i32: 2, 2, 1>} : memref<18x18x4xf32, #tpu.memory_space<vmem>>, vector<8x8x4xf32>
    %225 = arith.maximumf %223, %224 : vector<8x8x4xf32>
    %226 = vector.shape_cast %225 : vector<8x8x4xf32> to vector<64x4xf32>
    %227 = tpu.concatenate %93, %226 in 1 : vector<64x8xf32>, vector<64x4xf32> -> vector<64x12xf32>
    %c0_179 = arith.constant 0 : index
    %c0_180 = arith.constant 0 : index
    %c0_181 = arith.constant 0 : index
    %228 = vector.load %arg4[%c0_179, %c0_180, %c0_181] : memref<1x64x12xf32, #tpu.memory_space<vmem>>, vector<1x64x12xf32>
    %229 = vector.shape_cast %228 : vector<1x64x12xf32> to vector<64x12xf32>
    %230 = vector.shape_cast %227 : vector<64x12xf32> to vector<1x64x12xf32>
    tpu.vector_store %arg4[%c0_179, %c0_180, %c0_181], %230 {strides = array<i32>} : memref<1x64x12xf32, #tpu.memory_space<vmem>>, vector<1x64x12xf32>,
    return
  }
  func.func @transform_0(%arg0: i32) -> (i32, i32, i32, i32) {
    %c0_i32 = arith.constant 0 : i32
    %c0_i32_0 = arith.constant 0 : i32
    %c0_i32_1 = arith.constant 0 : i32
    %c0_i32_2 = arith.constant 0 : i32
    return %arg0, %c0_i32, %c0_i32_0, %c0_i32_1 : i32, i32, i32, i32
  }
  func.func @transform_1(%arg0: i32) -> (i32, i32, i32) {
    %c0_i32 = arith.constant 0 : i32
    %c0_i32_0 = arith.constant 0 : i32
    %c0_i32_1 = arith.constant 0 : i32
    %c0_i32_2 = arith.constant 0 : i32
    return %c0_i32, %c0_i32_0, %c0_i32_1 : i32, i32, i32
  }
  func.func @transform_2(%arg0: i32) -> (i32, i32) {
    %c0_i32 = arith.constant 0 : i32
    %c0_i32_0 = arith.constant 0 : i32
    %c0_i32_1 = arith.constant 0 : i32
    return %c0_i32, %c0_i32_0 : i32, i32
  }
  func.func @transform_3(%arg0: i32) -> (i32, i32, i32) {
    %c0_i32 = arith.constant 0 : i32
    %c0_i32_0 = arith.constant 0 : i32
    %c0_i32_1 = arith.constant 0 : i32
    return %arg0, %c0_i32, %c0_i32_0 : i32, i32, i32
  }
}

</mosaic_0001>

<bundles_post_ra>
// kernel: tpu_custom_call.1
= control target key start
LH: loop header
LB: loop body
LE: loop exit
PB: predicated region body
PF: predicated region fallthrough
CT: control target
= control target key end

     0   :  { %s2021_s12 = smov 0   ;;  %s2533_s0 = inlined_call_operand.vmem [shape: f32[2,16,16,4], index: 0, kind: input, shape index: {}]   ;;  %s2534_s1 = inlined_call_operand.vmem [shape: bf16[9,4,8], index: 1, kind: input, shape index: {}]   ;;  %s2535_s2 = inlined_call_operand.vmem [shape: f32[1,8], index: 2, kind: input, shape index: {}]   ;;  %s2536_s3 = inlined_call_operand.vmem [shape: f32[2,64,12], index: 3, kind: output, shape index: {}]  }
   0x1 LB: > { %s1776_s13 = sadd.s32 4294967295, %s1997_s12   ;;  %p1780_p0 = scmp.ge.s32.totalorder %s1997_s12, 1  ;;  %s1997_s12 = sphi %s2021_s12, %s13_s12  }
   0x2   : > { %p137_p1 = scmp.lt.s32.totalorder %s1997_s12, 3 }
   0x4   : > { %p138_p2 = pnand %p1780_p0, %p137_p1 }
   0x5   : > { %v298_v0 = vld [vmem:[%s2534_s1] sm:$0x3] (!%p138_p2)  ;;  %vm311_vm0 = vcmask (!%p138_p2), 1041408   ;;  %p161_p3 = scmp.lt.s32.totalorder (!%p138_p2), %s1776_s13, 1  ;;  %vm172_vm1 = vcmask (!%p138_p2), 31744   ;;  %v1999_v2 = vmov (!%p138_p2), 0.0   ;;  %v1435_v51 = vlaneseq (!%p138_p2) }
   0x6   : > { %141 = sbr.rel (%p138_p2) target bundleno = 350 (0x15e), region = 32  ;;  %1972 = vmatprep.subr.msk.bf16.mxu1 (!%p138_p2), %vm311_vm0, %v298_v0  ;;  %1971 = vmatprep.subr.msk.bf16.mxu0 (!%p138_p2), %vm311_vm0, %v298_v0  ;;  %v313_v1 = vsel (!%p138_p2), %vm311_vm0, %v298_v0, 0  ;;  %173 = vst.msk [vmem:[#allocation2] sm:$0xff] (!%p138_p2), %vm172_vm1, %v1999_v2  ;;  %174 = vst.msk [vmem:[#allocation2 + $0x8] sm:$0xff] (!%p138_p2), %vm172_vm1, %v1999_v2  ;;  %vm182_vm2 = vcmask (!%p138_p2), 24576   ;;  %vm175_vm3 = vcmask (!%p138_p2), 25600  }
   0x7   : > { %v2040_v3 = vld [vmem:[%s2534_s1 + $0x2] sm:$0x3] (!%p138_p2)  ;;  %v2045_v4 = vld [vmem:[%s2534_s1 + $0x4] sm:$0x3] (!%p138_p2)  ;;  %1970 = vmatpush3.bf16.msra.mxu1 (!%p138_p2), %v313_v1  ;;  %1880 = vmatpush3.bf16.msra.mxu0 (!%p138_p2), %v313_v1  ;;  %184 = vst.msk [vmem:[#allocation2 + $0x30] sm:$0x1] (!%p138_p2), %vm182_vm2, %v1999_v2 }
   0x8   : > { %183 = vst.msk [vmem:[#allocation2 + $0x18] sm:$0x1] (!%p138_p2), %vm182_vm2, %v1999_v2  ;;  %185 = vst.msk [vmem:[#allocation2 + $0x48] sm:$0x1] (!%p138_p2), %vm182_vm2, %v1999_v2  ;;  %1973 = vmatprep.subr.msk.bf16.mxu1 (!%p138_p2), %vm311_vm0, %v2040_v3  ;;  %1974 = vmatprep.subr.msk.bf16.mxu0 (!%p138_p2), %vm311_vm0, %v2045_v4  ;;  %v550_v42 = vsel (!%p138_p2), %vm311_vm0, %v2045_v4, 0  ;;  %v424_v44 = vsel (!%p138_p2), %vm311_vm0, %v2040_v3, 0 }
   0x9   : > { %186 = vst.msk [vmem:[#allocation2 + $0x60] sm:$0x1] (!%p138_p2), %vm182_vm2, %v1999_v2  ;;  %187 = vst.msk [vmem:[#allocation2 + $0x78] sm:$0x1] (!%p138_p2), %vm182_vm2, %v1999_v2  ;;  %v1799_v45 = vld [vmem:[%s2534_s1 + $0x6] sm:$0x3] (!%p138_p2) }
   0xa   : > { %188 = vst.msk [vmem:[#allocation2 + $0x90] sm:$0x1] (!%p138_p2), %vm182_vm2, %v1999_v2  ;;  %189 = vst.msk [vmem:[#allocation2 + $0xa8] sm:$0x1] (!%p138_p2), %vm182_vm2, %v1999_v2  ;;  %v1804_v47 = vld [vmem:[%s2534_s1 + $0x8] sm:$0x3] (!%p138_p2) }
   0xb   : > { %190 = vst.msk [vmem:[#allocation2 + $0xc0] sm:$0x1] (!%p138_p2), %vm182_vm2, %v1999_v2  ;;  %191 = vst.msk [vmem:[#allocation2 + $0xd8] sm:$0x1] (!%p138_p2), %vm182_vm2, %v1999_v2  ;;  %v1436_v3 = vshrl.u32 (!%p138_p2), %v1435_v51, 7  ;;  %s2000_s9 = smov (!%p138_p2), 8  }
   0xc   : > { %192 = vst.msk [vmem:[#allocation2 + $0xf0] sm:$0x1] (!%p138_p2), %vm182_vm2, %v1999_v2  ;;  %193 = vst.msk [vmem:[#allocation2 + $0x108] sm:$0x1] (!%p138_p2), %vm182_vm2, %v1999_v2  ;;  %vm380_vm13 = vcmask (!%p138_p2), 64512   ;;  %vm1666_vm14 = vcmask (!%p138_p2), 97280  }
   0xd   : > { %s2544_s13 = smov (!%p161_p3, %s1776_s13), 1  ;;  %194 = vst.msk [vmem:[#allocation2 + $0x120] sm:$0x1] %vm182_vm2, %v1999_v2  ;;  %195 = vst.msk [vmem:[#allocation2 + $0x138] sm:$0x1] %vm182_vm2, %v1999_v2 }
   0xe   : > { %196 = vst.msk [vmem:[#allocation2 + $0x150] sm:$0x1] %vm182_vm2, %v1999_v2  ;;  %197 = vst.msk [vmem:[#allocation2 + $0x168] sm:$0x1] %vm182_vm2, %v1999_v2  ;;  %s1832_s20 = sshll.u32 %s2544_s13, 8  ;;  %s1833_s14 = sshll.u32 %s2544_s13, 6 }
   0xf   : > { %198 = vst.msk [vmem:[#allocation2 + $0x180] sm:$0x1] %vm182_vm2, %v1999_v2  ;;  %s2073_s23 = scalar_lea.vmem %s2533_s0, %s1832_s20  ;;  %v279_v19 = vld [vmem:[#allocation2] ss:$2 sm:$0xff]  ;;  %v390_v28 = vld [vmem:[#allocation2 + $0x1] ss:$2 sm:$0xff]  ;;  %s2503_s13 = scalar_lea.vmem %s2536_s3, %s1833_s14 }
  0x10   : > { %176 = vst.msk [vmem:[#allocation2 + $0x10] sm:$0x3] %vm175_vm3, %v1999_v2  ;;  %v217_v5 = vld [vmem:[%s2073_s23 + $0x10] sm:$0xff]  ;;  %v218_v6 = vld [vmem:[%s2073_s23 + $0x18] sm:$0xff]  ;;  %v215_v20 = vld [vmem:[%s2073_s23] sm:$0xff] }
  0x11   : > { %v229_v7 = vld [vmem:[%s2073_s23 + $0x70] sm:$0xff]  ;;  %249 = vst.msk [vmem:[#allocation2 + $0x31] sm:$0xff] %vm172_vm1, %v217_v5  ;;  %250 = vst.msk [vmem:[#allocation2 + $0x39] sm:$0xff] %vm172_vm1, %v218_v6  ;;  %v230_v8 = vld [vmem:[%s2073_s23 + $0x78] sm:$0xff] }
  0x12   : > { %v233_v9 = vld [vmem:[%s2073_s23 + $0x90] sm:$0xff]  ;;  %v234_v10 = vld [vmem:[%s2073_s23 + $0x98] sm:$0xff]  ;;  %261 = vst.msk [vmem:[#allocation2 + $0xc1] sm:$0xff] %vm172_vm1, %v229_v7  ;;  %262 = vst.msk [vmem:[#allocation2 + $0xc9] sm:$0xff] %vm172_vm1, %v230_v8  ;;  %v675_v7 = vsel %vm311_vm0, %v1799_v45, 0  ;;  %v801_v8 = vsel %vm311_vm0, %v1804_v47, 0 }
  0x13   : > { %265 = vst.msk [vmem:[#allocation2 + $0xf1] sm:$0xff] %vm172_vm1, %v233_v9  ;;  %266 = vst.msk [vmem:[#allocation2 + $0xf9] sm:$0xff] %vm172_vm1, %v234_v10  ;;  %v221_v11 = vld [vmem:[%s2073_s23 + $0x30] sm:$0xff]  ;;  %v222_v12 = vld [vmem:[%s2073_s23 + $0x38] sm:$0xff] }
  0x14   : > { %v225_v13 = vld [vmem:[%s2073_s23 + $0x50] sm:$0xff]  ;;  %v226_v14 = vld [vmem:[%s2073_s23 + $0x58] sm:$0xff]  ;;  %253 = vst.msk [vmem:[#allocation2 + $0x61] sm:$0xff] %vm172_vm1, %v221_v11  ;;  %254 = vst.msk [vmem:[#allocation2 + $0x69] sm:$0xff] %vm172_vm1, %v222_v12  ;;  %v1437_v11 = vmul.u32 2, %v1436_v3 }
  0x15   : > { %v237_v15 = vld [vmem:[%s2073_s23 + $0xb0] sm:$0xff]  ;;  %257 = vst.msk [vmem:[#allocation2 + $0x91] sm:$0xff] %vm172_vm1, %v225_v13  ;;  %258 = vst.msk [vmem:[#allocation2 + $0x99] sm:$0xff] %vm172_vm1, %v226_v14  ;;  %v238_v16 = vld [vmem:[%s2073_s23 + $0xb8] sm:$0xff] }
  0x16   : > { %v241_v17 = vld [vmem:[%s2073_s23 + $0xd0] sm:$0xff]  ;;  %v242_v18 = vld [vmem:[%s2073_s23 + $0xd8] sm:$0xff]  ;;  %269 = vst.msk [vmem:[#allocation2 + $0x121] sm:$0xff] %vm172_vm1, %v237_v15  ;;  %270 = vst.msk [vmem:[#allocation2 + $0x129] sm:$0xff] %vm172_vm1, %v238_v16  ;;  %vm1461_vm6 = vcmp.ge.s32.totalorder %v1437_v11, 0  ;;  %vm1464_vm7 = vcmp.lt.s32.totalorder %v1437_v11, 16 }
  0x17   : > { %273 = vst.msk [vmem:[#allocation2 + $0x151] sm:$0xff] %vm172_vm1, %v241_v17  ;;  %274 = vst.msk [vmem:[#allocation2 + $0x159] sm:$0xff] %vm172_vm1, %v242_v18  ;;  %v216_v21 = vld [vmem:[%s2073_s23 + $0x8] sm:$0xff]  ;;  %v219_v22 = vld [vmem:[%s2073_s23 + $0x20] sm:$0xff] }
  0x18   : > { %v220_v23 = vld [vmem:[%s2073_s23 + $0x28] sm:$0xff]  ;;  %247 = vst.msk [vmem:[#allocation2 + $0x19] sm:$0xff] %vm172_vm1, %v215_v20  ;;  %248 = vst.msk [vmem:[#allocation2 + $0x21] sm:$0xff] %vm172_vm1, %v216_v21  ;;  %v223_v24 = vld [vmem:[%s2073_s23 + $0x40] sm:$0xff]  ;;  %v1438_v21 = vadd.s32 4294967295, %v1437_v11 }
  0x19   : > { %251 = vst.msk [vmem:[#allocation2 + $0x49] sm:$0xff] %vm172_vm1, %v219_v22  ;;  %252 = vst.msk [vmem:[#allocation2 + $0x51] sm:$0xff] %vm172_vm1, %v220_v23  ;;  %v224_v25 = vld [vmem:[%s2073_s23 + $0x48] sm:$0xff]  ;;  %v227_v26 = vld [vmem:[%s2073_s23 + $0x60] sm:$0xff] }
  0x1a   : > { %v281_v27 = vld [vmem:[#allocation2 + $0x30] ss:$2 sm:$0xff]  ;;  %255 = vst.msk [vmem:[#allocation2 + $0x79] sm:$0xff] %vm172_vm1, %v223_v24  ;;  %256 = vst.msk [vmem:[#allocation2 + $0x81] sm:$0xff] %vm172_vm1, %v224_v25  ;;  %v287_v30 = vld [vmem:[#allocation2 + $0xc0] ss:$2 sm:$0xff] }
  0x1b   : > { %259 = vst.msk [vmem:[#allocation2 + $0xa9] sm:$0xff] %vm172_vm1, %v227_v26  ;;  %v294_v29 = vpack.c.bf16 %v281_v27, %v279_v19  ;;  %v289_v31 = vld [vmem:[#allocation2 + $0xf0] ss:$2 sm:$0xff]  ;;  %v392_v32 = vld [vmem:[#allocation2 + $0x31] ss:$2 sm:$0xff]  ;;  %v228_v56 = vld [vmem:[%s2073_s23 + $0x68] sm:$0xff] }
  0x1c   : > { %v296_v33 = vpack.c.bf16 %v289_v31, %v287_v30  ;;  %v283_v34 = vld [vmem:[#allocation2 + $0x60] ss:$2 sm:$0xff]  ;;  %v285_v37 = vld [vmem:[#allocation2 + $0x90] ss:$2 sm:$0xff]  ;;  %v405_v41 = vpack.c.bf16 %v392_v32, %v390_v28  ;;  %v394_v48 = vld [vmem:[#allocation2 + $0x61] ss:$2 sm:$0xff] }
  0x1d   : > { %v516_v35 = vld [vmem:[#allocation2 + $0x2] ss:$2 sm:$0xff]  ;;  %v518_v36 = vld [vmem:[#allocation2 + $0x32] ss:$2 sm:$0xff]  ;;  %1881 = vmatprep.mubr.msk.bf16.mxu0 %vm172_vm1, %v294_v29  ;;  %v295_v38 = vpack.c.bf16 %v285_v37, %v283_v34  ;;  %v396_v49 = vld [vmem:[#allocation2 + $0x91] ss:$2 sm:$0xff] }
  0x1e   : > { %1885 = vmatprep.mubr.msk.bf16.mxu1 %vm172_vm1, %v296_v33  ;;  %v291_v39 = vld [vmem:[#allocation2 + $0x120] ss:$2 sm:$0xff]  ;;  %v293_v40 = vld [vmem:[#allocation2 + $0x150] ss:$2 sm:$0xff]  ;;  %v531_v46 = vpack.c.bf16 %v518_v36, %v516_v35  ;;  %v398_v52 = vld [vmem:[#allocation2 + $0xc1] ss:$2 sm:$0xff]  ;;  %v406_v4 = vpack.c.bf16 %v396_v49, %v394_v48 }
  0x1f   : > { %v297_v43 = vpack.c.bf16 %v293_v40, %v291_v39  ;;  %1882 = vmatmul.mubr.msk.bf16.vlgmr.msra.gmra.mrb[0].mxu0 %vm172_vm1, %v295_v38  ;;  %v520_v50 = vld [vmem:[#allocation2 + $0x62] ss:$2 sm:$0xff]  ;;  %v400_v53 = vld [vmem:[#allocation2 + $0xf1] ss:$2 sm:$0xff]  ;;  %v522_v54 = vld [vmem:[#allocation2 + $0x92] ss:$2 sm:$0xff] }
  0x20   : > { %1900 = vmatpush3.bf16.msra.mxu0 %v550_v42  ;;  %v524_v55 = vld [vmem:[#allocation2 + $0xc2] ss:$2 sm:$0xff]  ;;  %v526_v57 = vld [vmem:[#allocation2 + $0xf2] ss:$2 sm:$0xff]  ;;  %260 = vst.msk [vmem:[#allocation2 + $0xb1] sm:$0xff] %vm172_vm1, %v228_v56  ;;  %1901 = vmatprep.mubr.msk.bf16.mxu0 %vm172_vm1, %v531_v46  ;;  %v532_v63 = vpack.c.bf16 %v522_v54, %v520_v50  ;;  %v407_v6 = vpack.c.bf16 %v400_v53, %v398_v52  ;;  %vm1439_vm4 = vcmp.ge.s32.totalorder %v1438_v21, 0  ;;  %vm2191_vm11 = vmand %vm1461_vm6, %vm1464_vm7 }
  0x21   : > { %1886 = vmatmul.mubr.msk.bf16.vlgmr.msra.gmra.mrb[0].mxu1 %vm172_vm1, %v297_v43  ;;  %v231_v58 = vld [vmem:[%s2073_s23 + $0x80] sm:$0xff]  ;;  %v232_v59 = vld [vmem:[%s2073_s23 + $0x88] sm:$0xff]  ;;  %1976 = vmatprep.subr.msk.bf16.mxu0 %vm311_vm0, %v1804_v47  ;;  %v533_v5 = vpack.c.bf16 %v526_v57, %v524_v55  ;;  %v404_v15 = vld [vmem:[#allocation2 + $0x151] ss:$2 sm:$0xff]  ;;  %vm1442_vm5 = vcmp.lt.s32.totalorder %v1438_v21, 16  ;;  %v1491_v27 = vadd.s32 1, %v1437_v11 }
  0x22   : > { %1890 = vmatpush3.bf16.msra.mxu1 %v424_v44  ;;  %1891 = vmatprep.mubr.msk.bf16.mxu1 %vm172_vm1, %v405_v41  ;;  %v235_v60 = vld [vmem:[%s2073_s23 + $0xa0] sm:$0xff]  ;;  %v236_v61 = vld [vmem:[%s2073_s23 + $0xa8] sm:$0xff]  ;;  %263 = vst.msk [vmem:[#allocation2 + $0xd9] sm:$0xff] %vm172_vm1, %v231_v58  ;;  %264 = vst.msk [vmem:[#allocation2 + $0xe1] sm:$0xff] %vm172_vm1, %v232_v59 }
  0x23   : > { %1975 = vmatprep.subr.msk.bf16.mxu1 %vm311_vm0, %v1799_v45  ;;  %v239_v62 = vld [vmem:[%s2073_s23 + $0xc0] sm:$0xff]  ;;  %267 = vst.msk [vmem:[#allocation2 + $0x109] sm:$0xff] %vm172_vm1, %v235_v60  ;;  %268 = vst.msk [vmem:[#allocation2 + $0x111] sm:$0xff] %vm172_vm1, %v236_v61  ;;  %v240_v0 = vld [vmem:[%s2073_s23 + $0xc8] sm:$0xff]  ;;  %vm1492_vm9 = vcmp.ge.s32.totalorder %v1491_v27, 0  ;;  %vm1495_vm10 = vcmp.lt.s32.totalorder %v1491_v27, 16 }
  0x24   : > { %v243_v1 = vld [vmem:[%s2073_s23 + $0xe0] sm:$0xff]  ;;  %v244_v2 = vld [vmem:[%s2073_s23 + $0xe8] sm:$0xff]  ;;  %271 = vst.msk [vmem:[#allocation2 + $0x139] sm:$0xff] %vm172_vm1, %v239_v62  ;;  %272 = vst.msk [vmem:[#allocation2 + $0x141] sm:$0xff] %vm172_vm1, %v240_v0 }
  0x25   : > { %275 = vst.msk [vmem:[#allocation2 + $0x169] sm:$0xff] %vm172_vm1, %v243_v1  ;;  %276 = vst.msk [vmem:[#allocation2 + $0x171] sm:$0xff] %vm172_vm1, %v244_v2  ;;  %v1809_v9 = vld [vmem:[%s2534_s1 + $0xa] sm:$0x3]  ;;  %v2162_v10 = vld [vmem:[%s2534_s1 + $0xc] sm:$0x3] }
  0x26   : > { %v402_v12 = vld [vmem:[#allocation2 + $0x121] ss:$2 sm:$0xff]  ;;  %v528_v13 = vld [vmem:[#allocation2 + $0x122] ss:$2 sm:$0xff]  ;;  %v530_v14 = vld [vmem:[#allocation2 + $0x152] ss:$2 sm:$0xff] }
  0x27   : > { %1902 = vmatmul.mubr.msk.bf16.vlgmr.msra.gmra.mrb[4].mxu0 %vm172_vm1, %v532_v63  ;;  %v767_v16 = vld [vmem:[#allocation2 + $0x19] ss:$2 sm:$0xff]  ;;  %v769_v17 = vld [vmem:[#allocation2 + $0x49] ss:$2 sm:$0xff]  ;;  %v641_v18 = vld [vmem:[#allocation2 + $0x18] ss:$2 sm:$0xff]  ;;  %v534_v20 = vpack.c.bf16 %v530_v14, %v528_v13  ;;  %v408_v22 = vpack.c.bf16 %v404_v15, %v402_v12 }
  0x28   : > { %1905 = vmatprep.mubr.msk.bf16.mxu0 %vm172_vm1, %v533_v5  ;;  %1920 = vmatpush3.bf16.msra.mxu0 %v801_v8  ;;  %v643_v19 = vld [vmem:[#allocation2 + $0x48] ss:$2 sm:$0xff]  ;;  %v782_v23 = vpack.c.bf16 %v769_v17, %v767_v16  ;;  %v246_v26 = vld [vmem:[%s2073_s23 + $0xf8] sm:$0xff]  ;;  %v773_v30 = vld [vmem:[#allocation2 + $0xa9] ss:$2 sm:$0xff]  ;;  %v927_v49 = vsel %vm311_vm0, %v1809_v9, 0 }
  0x29   : > { %1892 = vmatmul.mubr.msk.bf16.vlgmr.msra.gmra.mrb[4].mxu1 %vm172_vm1, %v406_v4  ;;  %1978 = vmatprep.subr.msk.bf16.mxu0 %vm311_vm0, %v2162_v10  ;;  %v656_v24 = vpack.c.bf16 %v643_v19, %v641_v18  ;;  %v245_v25 = vld [vmem:[%s2073_s23 + $0xf0] sm:$0xff]  ;;  %278 = vst.msk [vmem:[#allocation2 + $0x189] sm:$0xff] %vm172_vm1, %v246_v26  ;;  %v645_v28 = vld [vmem:[#allocation2 + $0x78] ss:$2 sm:$0xff]  ;;  %v771_v29 = vld [vmem:[#allocation2 + $0x79] ss:$2 sm:$0xff] }
  0x2a   : > { %1910 = vmatpush3.bf16.msra.mxu1 %v675_v7  ;;  %1895 = vmatprep.mubr.msk.bf16.mxu1 %vm172_vm1, %v407_v6  ;;  %277 = vst.msk [vmem:[#allocation2 + $0x181] sm:$0xff] %vm172_vm1, %v245_v25  ;;  %v647_v31 = vld [vmem:[#allocation2 + $0xa8] ss:$2 sm:$0xff]  ;;  %v775_v32 = vld [vmem:[#allocation2 + $0xd9] ss:$2 sm:$0xff]  ;;  %v783_v36 = vpack.c.bf16 %v773_v30, %v771_v29  ;;  %vm2180_vm8 = vmand %vm1439_vm4, %vm1442_vm5  ;;  %v1053_v58 = vsel %vm311_vm0, %v2162_v10, 0 }
  0x2b   : > { %1977 = vmatprep.subr.msk.bf16.mxu1 %vm311_vm0, %v1809_v9  ;;  %v777_v33 = vld [vmem:[#allocation2 + $0x109] ss:$2 sm:$0xff]  ;;  %v649_v34 = vld [vmem:[#allocation2 + $0xd8] ss:$2 sm:$0xff]  ;;  %v651_v35 = vld [vmem:[#allocation2 + $0x108] ss:$2 sm:$0xff]  ;;  %v657_v40 = vpack.c.bf16 %v647_v31, %v645_v28 }
  0x2c   : > { %v1514_v38 = vld [vmem:[#allocation2 + $0x18] ss:$2 sm:$0xff]  ;;  %v1538_v39 = vld [vmem:[#allocation2 + $0x19] ss:$2 sm:$0xff]  ;;  %v784_v41 = vpack.c.bf16 %v777_v33, %v775_v32  ;;  %v658_v45 = vpack.c.bf16 %v651_v35, %v649_v34  ;;  %v1819_v46 = vld [vmem:[%s2534_s1 + $0xe] sm:$0x3] }
  0x2d   : > { %v1522_v42 = vsel %vm2180_vm8, %v1514_v38, -inf  ;;  %v1554_v43 = vld [vmem:[#allocation2 + $0x1a] ss:$2 sm:$0xff]  ;;  %v779_v50 = vld [vmem:[#allocation2 + $0x139] ss:$2 sm:$0xff]  ;;  %vm2209_vm12 = vmand %vm1492_vm9, %vm1495_vm10  ;;  %v2227_v10 = vsel %vm311_vm0, %v1819_v46, 0 }
  0x2e   : > { %v1570_v44 = vld [vmem:[#allocation2 + $0x30] ss:$2 sm:$0xff]  ;;  %v1546_v47 = vmax.f32 %v1522_v42, %v1538_v39  ;;  %v781_v51 = vld [vmem:[#allocation2 + $0x169] ss:$2 sm:$0xff]  ;;  %v2198_v53 = vld [vmem:[#allocation2 + $0x60] ss:$2 sm:$0xff] }
  0x2f   : > { %1906 = vmatmul.mubr.msk.bf16.gmra.mrb[8].mxu0 %vm172_vm1, %v534_v20  ;;  %v2196_v52 = vld [vmem:[#allocation2 + $0x30] ss:$2 sm:$0xff]  ;;  %v1578_v55 = vsel %vm2180_vm8, %v1570_v44, -inf  ;;  %v1429_v56 = vld [vmem:[#allocation2 + $0x60] ss:$2 sm:$0xff]  ;;  %v785_v14 = vpack.c.bf16 %v781_v51, %v779_v50 }
  0x30   : > { %1921 = vmatprep.mubr.msk.bf16.mxu0 %vm172_vm1, %v782_v23  ;;  %v2203_v54 = vld [vmem:[%s2534_s1 + $0x10] sm:$0x3]  ;;  %v1562_v59 = vmax.f32 %v1546_v47, %v1554_v43  ;;  %v1447_v60 = vsel %vm2180_vm8, %v1429_v56, -inf  ;;  %v1455_v61 = vld [vmem:[#allocation2 + $0x61] ss:$2 sm:$0xff]  ;;  %v1034_v15 = vpack.c.bf16 %v2198_v53, %v2196_v52 }
  0x31   : > { %1896 = vmatmul.mubr.msk.bf16.gmra.mrb[8].mxu1 %vm172_vm1, %v408_v22  ;;  %v1485_v62 = vld [vmem:[#allocation2 + $0x62] ss:$2 sm:$0xff]  ;;  %v1594_v1 = vld [vmem:[#allocation2 + $0x31] ss:$2 sm:$0xff]  ;;  %v1469_v2 = vsel %vm2191_vm11, %v1455_v61, -inf  ;;  %v1305_v61 = vsel %vm311_vm0, %v2203_v54, 0 }
  0x32   : > { %1911 = vmatprep.mubr.msk.bf16.mxu1 %vm172_vm1, %v656_v24  ;;  %v893_v63 = vld [vmem:[#allocation2 + $0x1a] ss:$2 sm:$0xff]  ;;  %v895_v0 = vld [vmem:[#allocation2 + $0x4a] ss:$2 sm:$0xff]  ;;  %v1500_v3 = vsel %vm2209_vm12, %v1485_v62, -inf  ;;  %v1586_v7 = vmax.f32 %v1562_v59, %v1578_v55  ;;  %v1477_v9 = vmax.f32 %v1447_v60, %v1469_v2 }
  0x33   : > { %v1516_v4 = vld [vmem:[#allocation2 + $0x78] ss:$2 sm:$0xff]  ;;  %v655_v6 = vld [vmem:[#allocation2 + $0x168] ss:$2 sm:$0xff]  ;;  %v1540_v12 = vld [vmem:[#allocation2 + $0x79] ss:$2 sm:$0xff]  ;;  %v908_v26 = vpack.c.bf16 %v895_v0, %v893_v63 }
  0x34   : > { %v653_v5 = vld [vmem:[#allocation2 + $0x138] ss:$2 sm:$0xff]  ;;  %v1524_v11 = vsel %vm2180_vm8, %v1516_v4, -inf  ;;  %v1602_v16 = vmax.f32 %v1586_v7, %v1594_v1  ;;  %v1508_v17 = vmax.f32 %v1477_v9, %v1500_v3  ;;  %v1454_v19 = vld [vmem:[#allocation2 + $0x31] ss:$2 sm:$0xff] }
  0x35   : > { %v1610_v8 = vld [vmem:[#allocation2 + $0x32] ss:$2 sm:$0xff]  ;;  %v659_v21 = vpack.c.bf16 %v655_v6, %v653_v5  ;;  %v1468_v23 = vsel %vm2191_vm11, %v1454_v19, -inf  ;;  %v1539_v44 = vld [vmem:[#allocation2 + $0x49] ss:$2 sm:$0xff] }
  0x36   : > { %v1572_v13 = vld [vmem:[#allocation2 + $0x90] ss:$2 sm:$0xff]  ;;  %v2243_v28 = vld [vmem:[#allocation2 + $0xc0] ss:$2 sm:$0xff]  ;;  %v1618_v29 = vmax.f32 %v1602_v16, %v1610_v8  ;;  %v1532_v30 = vmax.f32 %v1508_v17, %v1524_v11  ;;  %v1596_v53 = vld [vmem:[#allocation2 + $0x91] ss:$2 sm:$0xff] }
  0x37   : > { %1922 = vmatmul.mubr.msk.bf16.vlgmr.msra.gmra.mrb[12].mxu0 %vm172_vm1, %v783_v36  ;;  %v1428_v18 = vld [vmem:[#allocation2 + $0x30] ss:$2 sm:$0xff]  ;;  %v2247_v33 = vld [vmem:[#allocation2 + $0x120] ss:$2 sm:$0xff]  ;;  %v1580_v35 = vsel %vm2180_vm8, %v1572_v13, -inf }
  0x38   : > { %1925 = vmatprep.mubr.msk.bf16.mxu0 %vm172_vm1, %v784_v41  ;;  %1940 = vmatpush3.bf16.msra.mxu0 %v1053_v58  ;;  %v1484_v20 = vld [vmem:[#allocation2 + $0x32] ss:$2 sm:$0xff]  ;;  %v1446_v22 = vsel %vm2180_vm8, %v1428_v18, -inf  ;;  %v1548_v42 = vmax.f32 %v1532_v30, %v1540_v12  ;;  %v1541_v7 = vld [vmem:[#allocation2 + $0xa9] ss:$2 sm:$0xff] }
  0x39   : > { %1912 = vmatmul.mubr.msk.bf16.vlgmr.msra.gmra.mrb[12].mxu1 %vm172_vm1, %v657_v40  ;;  %1980 = vmatprep.subr.msk.bf16.mxu0 %vm311_vm0, %v2203_v54  ;;  %v1499_v24 = vsel %vm2209_vm12, %v1484_v20, -inf  ;;  %v1515_v25 = vld [vmem:[#allocation2 + $0x48] ss:$2 sm:$0xff]  ;;  %v1476_v31 = vmax.f32 %v1446_v22, %v1468_v23  ;;  %v1518_v22 = vld [vmem:[#allocation2 + $0xd8] ss:$2 sm:$0xff] }
  0x3a   : > { %1915 = vmatprep.mubr.msk.bf16.mxu1 %vm172_vm1, %v658_v45  ;;  %1930 = vmatpush3.bf16.msra.mxu1 %v927_v49  ;;  %v2241_v27 = vld [vmem:[#allocation2 + $0x90] ss:$2 sm:$0xff]  ;;  %v1523_v36 = vsel %vm2180_vm8, %v1515_v25, -inf  ;;  %v1571_v56 = vld [vmem:[#allocation2 + $0x60] ss:$2 sm:$0xff] }
  0x3b   : > { %1979 = vmatprep.subr.msk.bf16.mxu1 %vm311_vm0, %v1819_v46  ;;  %v2245_v32 = vld [vmem:[#allocation2 + $0xf0] ss:$2 sm:$0xff]  ;;  %1634 = vrot.lane.b32.xlu0 %v1618_v29, %s2000_s9  ;;  %v1507_v43 = vmax.f32 %v1476_v31, %v1499_v24  ;;  %v1456_v46 = vld [vmem:[#allocation2 + $0x91] ss:$2 sm:$0xff]  ;;  %v1035_v60 = vpack.c.bf16 %v2243_v28, %v2241_v27  ;;  %v1573_v8 = vld [vmem:[#allocation2 + $0xc0] ss:$2 sm:$0xff] }
  0x3c   : > { %v1556_v34 = vld [vmem:[#allocation2 + $0x7a] ss:$2 sm:$0xff]  ;;  %v2256_v39 = vld [vmem:[#allocation2 + $0xaa] ss:$2 sm:$0xff]  ;;  %v1470_v49 = vsel %vm2191_vm11, %v1456_v46, -inf  ;;  %v1036_v3 = vpack.c.bf16 %v2247_v33, %v2245_v32  ;;  %v1579_v12 = vsel %vm2180_vm8, %v1571_v56, -inf }
  0x3d   : > { %v2254_v38 = vld [vmem:[#allocation2 + $0x7a] ss:$2 sm:$0xff]  ;;  %v2260_v41 = vld [vmem:[#allocation2 + $0x10a] ss:$2 sm:$0xff]  ;;  %v1564_v52 = vmax.f32 %v1548_v42, %v1556_v34  ;;  %v1531_v55 = vmax.f32 %v1507_v43, %v1523_v36  ;;  %v1595_v23 = vld [vmem:[#allocation2 + $0x61] ss:$2 sm:$0xff] }
  0x3e   : > { %v2258_v40 = vld [vmem:[#allocation2 + $0xda] ss:$2 sm:$0xff]  ;;  %v1555_v63 = vld [vmem:[#allocation2 + $0x4a] ss:$2 sm:$0xff]  ;;  %v909_v54 = vpack.c.bf16 %v2256_v39, %v2254_v38  ;;  %v1581_v25 = vsel %vm2180_vm8, %v1573_v8, -inf  ;;  %v1526_v36 = vsel %vm2180_vm8, %v1518_v22, -inf }
  0x3f   : > { %1926 = vmatmul.mubr.msk.bf16.gmra.mrb[16].mxu0 %vm172_vm1, %v785_v14  ;;  %v1430_v45 = vld [vmem:[#allocation2 + $0x90] ss:$2 sm:$0xff]  ;;  %v1588_v4 = vmax.f32 %v1564_v52, %v1580_v35  ;;  %v1547_v5 = vmax.f32 %v1531_v55, %v1539_v44  ;;  %v1431_v9 = vld [vmem:[#allocation2 + $0xc0] ss:$2 sm:$0xff]  ;;  %v910_v11 = vpack.c.bf16 %v2260_v41, %v2258_v40  ;;  %v1457_v14 = vld [vmem:[#allocation2 + $0xc1] ss:$2 sm:$0xff] }
  0x40   : > { %1941 = vmatprep.mubr.msk.bf16.mxu0 %vm172_vm1, %v1034_v15  ;;  %v1448_v47 = vsel %vm2180_vm8, %v1430_v45, -inf  ;;  %v1486_v50 = vld [vmem:[#allocation2 + $0x92] ss:$2 sm:$0xff]  ;;  %v1449_v13 = vsel %vm2180_vm8, %v1431_v9, -inf  ;;  %v1487_v15 = vld [vmem:[#allocation2 + $0xc2] ss:$2 sm:$0xff] }
  0x41   : > { %1916 = vmatmul.mubr.msk.bf16.gmra.mrb[16].mxu1 %vm172_vm1, %v659_v21  ;;  %v1517_v51 = vld [vmem:[#allocation2 + $0xa8] ss:$2 sm:$0xff]  ;;  %v1478_v58 = vmax.f32 %v1448_v47, %v1470_v49  ;;  %v1501_v59 = vsel %vm2209_vm12, %v1486_v50, -inf  ;;  %v1604_v18 = vmax.f32 %v1588_v4, %v1596_v53  ;;  %v1563_v19 = vmax.f32 %v1547_v5, %v1555_v63  ;;  %v2303_v28 = vld [vmem:[#allocation2 + $0x31] ss:$2 sm:$0xff] }
  0x42   : > { %1931 = vmatprep.mubr.msk.bf16.mxu1 %vm172_vm1, %v908_v26  ;;  %v1612_v62 = vld [vmem:[#allocation2 + $0x92] ss:$2 sm:$0xff]  ;;  %v1525_v0 = vsel %vm2180_vm8, %v1517_v51, -inf  ;;  %v1471_v21 = vsel %vm2191_vm11, %v1457_v14, -inf  ;;  %v1502_v27 = vsel %vm2209_vm12, %v1487_v15, -inf }
  0x43   : > { %v2278_v1 = vld [vmem:[#allocation2 + $0x13a] ss:$2 sm:$0xff]  ;;  %v2280_v2 = vld [vmem:[#allocation2 + $0x16a] ss:$2 sm:$0xff]  ;;  %v1509_v6 = vmax.f32 %v1478_v58, %v1501_v59  ;;  %v1479_v26 = vmax.f32 %v1449_v13, %v1471_v21  ;;  %v2305_v29 = vld [vmem:[#allocation2 + $0x61] ss:$2 sm:$0xff]  ;;  %v1620_v32 = vmax.f32 %v1604_v18, %v1612_v62  ;;  %v1587_v33 = vmax.f32 %v1563_v19, %v1579_v12 }
  0x44   : > { %v2292_v16 = vld [vmem:[#allocation2 + $0x150] ss:$2 sm:$0xff]  ;;  %v2294_v17 = vld [vmem:[#allocation2 + $0x180] ss:$2 sm:$0xff]  ;;  %v911_v39 = vpack.c.bf16 %v2280_v2, %v2278_v1  ;;  %v1597_v40 = vld [vmem:[#allocation2 + $0xc1] ss:$2 sm:$0xff]  ;;  %v1160_v1 = vpack.c.bf16 %v2305_v29, %v2303_v28 }
  0x45   : > { %v1533_v20 = vmax.f32 %v1509_v6, %v1525_v0  ;;  %v1557_v24 = vld [vmem:[#allocation2 + $0xaa] ss:$2 sm:$0xff]  ;;  %v1510_v41 = vmax.f32 %v1479_v26, %v1502_v27  ;;  %v1458_v43 = vld [vmem:[#allocation2 + $0xf1] ss:$2 sm:$0xff]  ;;  %v1603_v45 = vmax.f32 %v1587_v33, %v1595_v23  ;;  %v1037_v52 = vpack.c.bf16 %v2294_v17, %v2292_v16  ;;  %1638 = vrot.lane.b32.xlu1 %v1620_v32, %s2000_s9  ;;  %v1558_v56 = vld [vmem:[#allocation2 + $0xda] ss:$2 sm:$0xff] }
  0x46   : > { %v2307_v30 = vld [vmem:[#allocation2 + $0x32] ss:$2 sm:$0xff]  ;;  %v2309_v31 = vld [vmem:[#allocation2 + $0x62] ss:$2 sm:$0xff]  ;;  %v1542_v47 = vld [vmem:[#allocation2 + $0xd9] ss:$2 sm:$0xff] }
  0x47   : > { %1942 = vmatmul.mubr.msk.bf16.vlgmr.msra.gmra.mrb[20].mxu0 %vm172_vm1, %v1035_v60  ;;  %v1611_v34 = vld [vmem:[#allocation2 + $0x62] ss:$2 sm:$0xff]  ;;  %v1549_v35 = vmax.f32 %v1533_v20, %v1541_v7  ;;  %v1488_v44 = vld [vmem:[#allocation2 + $0xf2] ss:$2 sm:$0xff]  ;;  %v1472_v50 = vsel %vm2191_vm11, %v1458_v43, -inf  ;;  %v1534_v55 = vmax.f32 %v1510_v41, %v1526_v36  ;;  %v1286_v4 = vpack.c.bf16 %v2309_v31, %v2307_v30 }
  0x48   : > { %v2313_v38 = vld [vmem:[#allocation2 + $0xf0] ss:$2 sm:$0xff]  ;;  %1945 = vmatprep.mubr.msk.bf16.mxu0 %vm172_vm1, %v1036_v3  ;;  %1960 = vmatpush3.bf16.msra.mxu0 %v1305_v61  ;;  %v1503_v58 = vsel %vm2209_vm12, %v1488_v44, -inf  ;;  %v1619_v59 = vmax.f32 %v1603_v45, %v1611_v34  ;;  %v1543_v63 = vld [vmem:[#allocation2 + $0x109] ss:$2 sm:$0xff] }
  0x49   : > { %1932 = vmatmul.mubr.msk.bf16.vlgmr.msra.gmra.mrb[20].mxu1 %vm172_vm1, %v909_v54  ;;  %v1432_v42 = vld [vmem:[#allocation2 + $0xf0] ss:$2 sm:$0xff]  ;;  %v1565_v46 = vmax.f32 %v1549_v35, %v1557_v24  ;;  %v1582_v62 = vsel %vm2180_vm8, %v2313_v38, -inf  ;;  %v1575_v0 = vld [vmem:[#allocation2 + $0x120] ss:$2 sm:$0xff]  ;;  %v1550_v5 = vmax.f32 %v1534_v55, %v1542_v47 }
  0x4a   : > { %1935 = vmatprep.mubr.msk.bf16.mxu1 %vm172_vm1, %v910_v11  ;;  %1950 = vmatpush3.bf16.msra.mxu1 %v2227_v10  ;;  %v1450_v49 = vsel %vm2180_vm8, %v1432_v42, -inf  ;;  %v1519_v51 = vld [vmem:[#allocation2 + $0x108] ss:$2 sm:$0xff]  ;;  %v2337_v2 = vld [vmem:[#allocation2 + $0x91] ss:$2 sm:$0xff]  ;;  %v1583_v26 = vsel %vm2180_vm8, %v1575_v0, -inf }
  0x4b   : > { %v1613_v53 = vld [vmem:[#allocation2 + $0xc2] ss:$2 sm:$0xff]  ;;  %v1480_v10 = vmax.f32 %v1450_v49, %v1472_v50  ;;  %v1589_v60 = vmax.f32 %v1565_v46, %v1581_v25  ;;  %v1527_v61 = vsel %vm2180_vm8, %v1519_v51, -inf  ;;  %v2339_v3 = vld [vmem:[#allocation2 + $0xc1] ss:$2 sm:$0xff]  ;;  %1636 = vrot.lane.b32.xlu0 %v1619_v59, %s2000_s9  ;;  %v1566_v19 = vmax.f32 %v1550_v5, %v1558_v56 }
  0x4c   : > { %v1433_v7 = vld [vmem:[#allocation2 + $0x120] ss:$2 sm:$0xff]  ;;  %v1459_v8 = vld [vmem:[#allocation2 + $0x121] ss:$2 sm:$0xff]  ;;  %v1598_v20 = vld [vmem:[#allocation2 + $0xf1] ss:$2 sm:$0xff]  ;;  %v1161_v34 = vpack.c.bf16 %v2339_v3, %v2337_v2 }
  0x4d   : > { %v1511_v6 = vmax.f32 %v1480_v10, %v1503_v58  ;;  %v1489_v9 = vld [vmem:[#allocation2 + $0x122] ss:$2 sm:$0xff]  ;;  %v1605_v54 = vmax.f32 %v1589_v60, %v1597_v40  ;;  %v1451_v11 = vsel %vm2180_vm8, %v1433_v7, -inf  ;;  %v1473_v12 = vsel %vm2191_vm11, %v1459_v8, -inf  ;;  %v1275_v15 = vld [vmem:[#allocation2 + $0x92] ss:$2 sm:$0xff] }
  0x4e   : > { %v1504_v13 = vsel %vm2209_vm12, %v1489_v9, -inf  ;;  %v1520_v14 = vld [vmem:[#allocation2 + $0x138] ss:$2 sm:$0xff]  ;;  %v1481_v22 = vmax.f32 %v1451_v11, %v1473_v12  ;;  %v1590_v28 = vmax.f32 %v1566_v19, %v1582_v62  ;;  %v1544_v31 = vld [vmem:[#allocation2 + $0x139] ss:$2 sm:$0xff] }
  0x4f   : > { %v1277_v16 = vld [vmem:[#allocation2 + $0xc2] ss:$2 sm:$0xff]  ;;  %v1279_v17 = vld [vmem:[#allocation2 + $0xf2] ss:$2 sm:$0xff]  ;;  %v1535_v21 = vmax.f32 %v1511_v6, %v1527_v61  ;;  %1946 = vmatmul.mubr.msk.bf16.gmra.mrb[24].mxu0 %vm172_vm1, %v1037_v52  ;;  %v1621_v23 = vmax.f32 %v1605_v54, %v1613_v53  ;;  %v1528_v27 = vsel %vm2180_vm8, %v1520_v14, -inf }
  0x50   : > { %v1281_v18 = vld [vmem:[#allocation2 + $0x122] ss:$2 sm:$0xff]  ;;  %v1614_v24 = vld [vmem:[#allocation2 + $0xf2] ss:$2 sm:$0xff]  ;;  %1961 = vmatprep.mubr.msk.bf16.mxu0 %vm172_vm1, %v1286_v4  ;;  %v1512_v30 = vmax.f32 %v1481_v22, %v1504_v13  ;;  %v1460_v33 = vld [vmem:[#allocation2 + $0x151] ss:$2 sm:$0xff]  ;;  %v1606_v42 = vmax.f32 %v1590_v28, %v1598_v20  ;;  %v1287_v47 = vpack.c.bf16 %v1277_v16, %v1275_v15 }
  0x51   : > { %v1559_v25 = vld [vmem:[#allocation2 + $0x10a] ss:$2 sm:$0xff]  ;;  %1936 = vmatmul.mubr.msk.bf16.gmra.mrb[24].mxu1 %vm172_vm1, %v911_v39  ;;  %v1551_v29 = vmax.f32 %v1535_v21, %v1543_v63  ;;  %1640 = vrot.lane.b32.xlu1 %v1621_v23, %s2000_s9  ;;  %v1474_v36 = vsel %vm2191_vm11, %v1460_v33, -inf  ;;  %v1153_v40 = vld [vmem:[#allocation2 + $0xf1] ss:$2 sm:$0xff]  ;;  %v1288_v49 = vpack.c.bf16 %v1281_v18, %v1279_v17 }
  0x52   : > { %v1434_v32 = vld [vmem:[#allocation2 + $0x150] ss:$2 sm:$0xff]  ;;  %1951 = vmatprep.mubr.msk.bf16.mxu1 %vm172_vm1, %v1160_v1  ;;  %v1155_v41 = vld [vmem:[#allocation2 + $0x121] ss:$2 sm:$0xff]  ;;  %v1536_v44 = vmax.f32 %v1512_v30, %v1528_v27  ;;  %v1622_v53 = vmax.f32 %v1606_v42, %v1614_v24  ;;  %v1577_v57 = vld [vmem:[#allocation2 + $0x180] ss:$2 sm:$0xff] }
  0x53   : > { %v1452_v35 = vsel %vm2180_vm8, %v1434_v32, -inf  ;;  %v1490_v38 = vld [vmem:[#allocation2 + $0x152] ss:$2 sm:$0xff]  ;;  %v1567_v43 = vmax.f32 %v1551_v29, %v1559_v25  ;;  %v1599_v50 = vld [vmem:[#allocation2 + $0x121] ss:$2 sm:$0xff]  ;;  %v1162_v58 = vpack.c.bf16 %v1155_v41, %v1153_v40  ;;  %v1585_v11 = vsel %vm2180_vm8, %v1577_v57, -inf }
  0x54   : > { %v1521_v39 = vld [vmem:[#allocation2 + $0x168] ss:$2 sm:$0xff]  ;;  %v1482_v46 = vmax.f32 %v1452_v35, %v1474_v36  ;;  %v1505_v52 = vsel %vm2209_vm12, %v1490_v38, -inf  ;;  %v1552_v56 = vmax.f32 %v1536_v44, %v1544_v31  ;;  %v1545_v62 = vld [vmem:[#allocation2 + $0x169] ss:$2 sm:$0xff]  ;;  %1642 = vrot.lane.b32.xlu0 %v1622_v53, %s2000_s9 }
  0x55   : > { %v1576_v45 = vld [vmem:[#allocation2 + $0x150] ss:$2 sm:$0xff]  ;;  %v1529_v48 = vsel %vm2180_vm8, %v1521_v39, -inf  ;;  %v1591_v55 = vmax.f32 %v1567_v43, %v1583_v26  ;;  %v1600_v1 = vld [vmem:[#allocation2 + $0x151] ss:$2 sm:$0xff] }
  0x56   : > { %v1560_v51 = vld [vmem:[#allocation2 + $0x13a] ss:$2 sm:$0xff]  ;;  %v1513_v10 = vmax.f32 %v1482_v46, %v1505_v52  ;;  %v1584_v60 = vsel %vm2180_vm8, %v1576_v45, -inf  ;;  %v1561_v2 = vld [vmem:[#allocation2 + $0x16a] ss:$2 sm:$0xff] }
  0x57   : > { %v1615_v59 = vld [vmem:[#allocation2 + $0x122] ss:$2 sm:$0xff]  ;;  %v1607_v61 = vmax.f32 %v1591_v55, %v1599_v50  ;;  %v1568_v63 = vmax.f32 %v1552_v56, %v1560_v51  ;;  %1962 = vmatmul.mubr.msk.bf16.vlgmr.msra.gmra.mrb[28].mxu0 %vm172_vm1, %v1287_v47  ;;  %v1157_v3 = vld [vmem:[#allocation2 + $0x151] ss:$2 sm:$0xff]  ;;  %v1283_v4 = vld [vmem:[#allocation2 + $0x152] ss:$2 sm:$0xff] }
  0x58   : > { %v1537_v0 = vmax.f32 %v1513_v10, %v1529_v48  ;;  %1965 = vmatprep.mubr.msk.bf16.mxu0 %vm172_vm1, %v1288_v49  ;;  %v1285_v5 = vld [vmem:[#allocation2 + $0x182] ss:$2 sm:$0xff]  ;;  %v1159_v9 = vld [vmem:[#allocation2 + $0x181] ss:$2 sm:$0xff]  ;;  %v1616_v54 = vld [vmem:[#allocation2 + $0x152] ss:$2 sm:$0xff] }
  0x59   : > { %1952 = vmatmul.mubr.msk.bf16.vlgmr.msra.gmra.mrb[28].mxu1 %vm172_vm1, %v1161_v34  ;;  %v1623_v6 = vmax.f32 %v1607_v61, %v1615_v59  ;;  %v1592_v7 = vmax.f32 %v1568_v63, %v1584_v60  ;;  %v1289_v14 = vpack.c.bf16 %v1285_v5, %v1283_v4  ;;  %v1601_v15 = vld [vmem:[#allocation2 + $0x181] ss:$2 sm:$0xff]  ;;  %v1163_v16 = vpack.c.bf16 %v1159_v9, %v1157_v3  ;;  %v1617_v19 = vld [vmem:[#allocation2 + $0x182] ss:$2 sm:$0xff] }
  0x5a   : > { %v1553_v8 = vmax.f32 %v1537_v0, %v1545_v62  ;;  %1955 = vmatprep.mubr.msk.bf16.mxu1 %vm172_vm1, %v1162_v58 }
  0x5b   : > { %1644 = vrot.lane.b32.xlu1 %v1623_v6, %s2000_s9  ;;  %v1608_v12 = vmax.f32 %v1592_v7, %v1600_v1 }
  0x5c   : > { %v1569_v13 = vmax.f32 %v1553_v8, %v1561_v2 }
  0x5d   : > { %v1624_v17 = vmax.f32 %v1608_v12, %v1616_v54 }
  0x5e   : > { %v1593_v18 = vmax.f32 %v1569_v13, %v1585_v11 }
  0x5f   : > { %1646 = vrot.lane.b32.xlu0 %v1624_v17, %s2000_s9  ;;  %1966 = vmatmul.mubr.msk.bf16.gmra.mrb[32].mxu0 %vm172_vm1, %v1289_v14 }
  0x60   : > { %v1609_v20 = vmax.f32 %v1593_v18, %v1601_v15 }
  0x61   : > { %1956 = vmatmul.mubr.msk.bf16.gmra.mrb[32].mxu1 %vm172_vm1, %v1163_v16 }
  0x62   : > { %v1625_v21 = vmax.f32 %v1609_v20, %v1617_v19 }
  0x64   : > { %1648 = vrot.lane.b32.xlu1 %v1625_v21, %s2000_s9 }
  0xf2   : > { %v1883_v37 = vpop.f32.mrb[0].mxu0 }
  0xf3   : > { %383 = vst.msk [vmem:[#allocation3 + $0x10] sm:$0xff] %vm380_vm13, %v1883_v37  ;;  %v349_v23 = vpop.f32.mrb[1].mxu0 }
  0xf4   : > { %v1887_v22 = vpop.f32.mrb[0].mxu1  ;;  %381 = vst.msk [vmem:[#allocation3] sm:$0xff] %vm380_vm13, %v349_v23  ;;  %v1884_v25 = vpop.f32.mrb[2].mxu0 }
  0xf5   : > { %387 = vst.msk [vmem:[#allocation3 + $0x30] sm:$0xff] %vm380_vm13, %v1887_v22  ;;  %v365_v24 = vpop.f32.mrb[1].mxu1  ;;  %384 = vst.msk [vmem:[#allocation3 + $0x18] sm:$0xff] %vm380_vm13, %v1884_v25  ;;  %v352_v27 = vpop.f32.mrb[3].mxu0 }
  0xf6   : > { %385 = vst.msk [vmem:[#allocation3 + $0x20] sm:$0xff] %vm380_vm13, %v365_v24  ;;  %v1888_v26 = vpop.f32.mrb[2].mxu1  ;;  %382 = vst.msk [vmem:[#allocation3 + $0x8] sm:$0xff] %vm380_vm13, %v352_v27 }
  0xf7   : > { %388 = vst.msk [vmem:[#allocation3 + $0x38] sm:$0xff] %vm380_vm13, %v1888_v26  ;;  %v368_v28 = vpop.f32.mrb[3].mxu1 }
  0xf8   : > { %386 = vst.msk [vmem:[#allocation3 + $0x28] sm:$0xff] %vm380_vm13, %v368_v28 }
  0xfa   : > { %v493_v29 = vld [vmem:[#allocation3 + $0x10] sm:$0xff]  ;;  %v1903_v30 = vpop.f32.mrb[4].mxu0 }
  0xfb   : > { %v491_v32 = vld [vmem:[#allocation3] sm:$0xff]  ;;  %v586_v33 = vpop.f32.mrb[5].mxu0 }
  0xfc   : > { %v1893_v31 = vpop.f32.mrb[4].mxu1  ;;  %v494_v36 = vld [vmem:[#allocation3 + $0x18] sm:$0xff]  ;;  %v1904_v38 = vpop.f32.mrb[6].mxu0  ;;  %v497_v49 = vld [vmem:[#allocation3 + $0x30] sm:$0xff] }
  0xfd   : > { %v501_v34 = vadd.f32 %v1893_v31, %v493_v29  ;;  %v460_v35 = vpop.f32.mrb[5].mxu1  ;;  %v492_v41 = vld [vmem:[#allocation3 + $0x8] sm:$0xff]  ;;  %v589_v42 = vpop.f32.mrb[7].mxu0  ;;  %v495_v48 = vld [vmem:[#allocation3 + $0x20] sm:$0xff] }
  0xfe   : > { %v499_v39 = vadd.f32 %v491_v32, %v460_v35  ;;  %v1894_v40 = vpop.f32.mrb[6].mxu1  ;;  %v498_v58 = vld [vmem:[#allocation3 + $0x38] sm:$0xff] }
  0xff   : > { %509 = vst.msk [vmem:[#allocation3 + $0x10] sm:$0xff] %vm380_vm13, %v501_v34  ;;  %v502_v43 = vadd.f32 %v1894_v40, %v494_v36  ;;  %v463_v44 = vpop.f32.mrb[7].mxu1  ;;  %v496_v0 = vld [vmem:[#allocation3 + $0x28] sm:$0xff] }
 0x100   : > { %507 = vst.msk [vmem:[#allocation3] sm:$0xff] %vm380_vm13, %v499_v39  ;;  %v500_v45 = vadd.f32 %v492_v41, %v463_v44 }
 0x101   : > { %510 = vst.msk [vmem:[#allocation3 + $0x18] sm:$0xff] %vm380_vm13, %v502_v43 }
 0x102   : > { %508 = vst.msk [vmem:[#allocation3 + $0x8] sm:$0xff] %vm380_vm13, %v500_v45  ;;  %v1907_v46 = vpop.f32.mrb[8].mxu0 }
 0x103   : > { %v602_v50 = vpop.f32.mrb[9].mxu0 }
 0x104   : > { %v1897_v47 = vpop.f32.mrb[8].mxu1  ;;  %v1908_v53 = vpop.f32.mrb[10].mxu0 }
 0x105   : > { %v505_v51 = vadd.f32 %v1897_v47, %v497_v49  ;;  %v476_v52 = vpop.f32.mrb[9].mxu1  ;;  %v605_v59 = vpop.f32.mrb[11].mxu0 }
 0x106   : > { %v619_v55 = vld [vmem:[#allocation3 + $0x10] sm:$0xff]  ;;  %v503_v56 = vadd.f32 %v495_v48, %v476_v52  ;;  %v1898_v10 = vpop.f32.mrb[10].mxu1 }
 0x107   : > { %v627_v60 = vadd.f32 %v1903_v30, %v619_v55  ;;  %513 = vst.msk [vmem:[#allocation3 + $0x30] sm:$0xff] %vm380_vm13, %v505_v51  ;;  %v617_v62 = vld [vmem:[#allocation3] sm:$0xff]  ;;  %v506_v61 = vadd.f32 %v1898_v10, %v498_v58  ;;  %v479_v63 = vpop.f32.mrb[11].mxu1 }
 0x108   : > { %v625_v57 = vadd.f32 %v617_v62, %v586_v33  ;;  %511 = vst.msk [vmem:[#allocation3 + $0x20] sm:$0xff] %vm380_vm13, %v503_v56  ;;  %v620_v1 = vld [vmem:[#allocation3 + $0x18] sm:$0xff]  ;;  %v504_v2 = vadd.f32 %v496_v0, %v479_v63 }
 0x109   : > { %635 = vst.msk [vmem:[#allocation3 + $0x10] sm:$0xff] %vm380_vm13, %v627_v60  ;;  %v628_v3 = vadd.f32 %v1904_v38, %v620_v1  ;;  %514 = vst.msk [vmem:[#allocation3 + $0x38] sm:$0xff] %vm380_vm13, %v506_v61  ;;  %v618_v4 = vld [vmem:[#allocation3 + $0x8] sm:$0xff] }
 0x10a   : > { %633 = vst.msk [vmem:[#allocation3] sm:$0xff] %vm380_vm13, %v625_v57  ;;  %v626_v5 = vadd.f32 %v618_v4, %v589_v42  ;;  %512 = vst.msk [vmem:[#allocation3 + $0x28] sm:$0xff] %vm380_vm13, %v504_v2  ;;  %v1923_v6 = vpop.f32.mrb[12].mxu0 }
 0x10b   : > { %636 = vst.msk [vmem:[#allocation3 + $0x18] sm:$0xff] %vm380_vm13, %v628_v3  ;;  %v837_v8 = vpop.f32.mrb[13].mxu0 }
 0x10c   : > { %634 = vst.msk [vmem:[#allocation3 + $0x8] sm:$0xff] %vm380_vm13, %v626_v5  ;;  %v1913_v7 = vpop.f32.mrb[12].mxu1  ;;  %v1924_v54 = vpop.f32.mrb[14].mxu0 }
 0x10d   : > { %v711_v9 = vpop.f32.mrb[13].mxu1  ;;  %v840_v13 = vpop.f32.mrb[15].mxu0 }
 0x10e   : > { %v623_v11 = vld [vmem:[#allocation3 + $0x30] sm:$0xff]  ;;  %v1914_v12 = vpop.f32.mrb[14].mxu1 }
 0x10f   : > { %v631_v14 = vadd.f32 %v1907_v46, %v623_v11  ;;  %v621_v15 = vld [vmem:[#allocation3 + $0x20] sm:$0xff]  ;;  %v714_v16 = vpop.f32.mrb[15].mxu1 }
 0x110   : > { %v629_v17 = vadd.f32 %v621_v15, %v602_v50  ;;  %v624_v18 = vld [vmem:[#allocation3 + $0x38] sm:$0xff]  ;;  %v744_v19 = vld [vmem:[#allocation3 + $0x10] sm:$0xff] }
 0x111   : > { %639 = vst.msk [vmem:[#allocation3 + $0x30] sm:$0xff] %vm380_vm13, %v631_v14  ;;  %v632_v20 = vadd.f32 %v1908_v53, %v624_v18  ;;  %v752_v21 = vadd.f32 %v1913_v7, %v744_v19  ;;  %v622_v37 = vld [vmem:[#allocation3 + $0x28] sm:$0xff]  ;;  %v742_v22 = vld [vmem:[#allocation3] sm:$0xff] }
 0x112   : > { %637 = vst.msk [vmem:[#allocation3 + $0x20] sm:$0xff] %vm380_vm13, %v629_v17  ;;  %v630_v23 = vadd.f32 %v622_v37, %v605_v59  ;;  %v750_v24 = vadd.f32 %v742_v22, %v711_v9  ;;  %v745_v25 = vld [vmem:[#allocation3 + $0x18] sm:$0xff]  ;;  %v1927_v28 = vpop.f32.mrb[16].mxu0 }
 0x113   : > { %640 = vst.msk [vmem:[#allocation3 + $0x38] sm:$0xff] %vm380_vm13, %v632_v20  ;;  %760 = vst.msk [vmem:[#allocation3 + $0x10] sm:$0xff] %vm380_vm13, %v752_v21  ;;  %v753_v26 = vadd.f32 %v1914_v12, %v745_v25  ;;  %v743_v27 = vld [vmem:[#allocation3 + $0x8] sm:$0xff]  ;;  %v853_v31 = vpop.f32.mrb[17].mxu0 }
 0x114   : > { %638 = vst.msk [vmem:[#allocation3 + $0x28] sm:$0xff] %vm380_vm13, %v630_v23  ;;  %758 = vst.msk [vmem:[#allocation3] sm:$0xff] %vm380_vm13, %v750_v24  ;;  %v751_v29 = vadd.f32 %v743_v27, %v714_v16  ;;  %v1917_v30 = vpop.f32.mrb[16].mxu1  ;;  %v1928_v33 = vpop.f32.mrb[18].mxu0 }
 0x115   : > { %761 = vst.msk [vmem:[#allocation3 + $0x18] sm:$0xff] %vm380_vm13, %v753_v26  ;;  %v727_v32 = vpop.f32.mrb[17].mxu1  ;;  %v856_v35 = vpop.f32.mrb[19].mxu0 }
 0x116   : > { %759 = vst.msk [vmem:[#allocation3 + $0x8] sm:$0xff] %vm380_vm13, %v751_v29  ;;  %v1918_v34 = vpop.f32.mrb[18].mxu1 }
 0x117   : > { %v730_v36 = vpop.f32.mrb[19].mxu1 }
 0x118   : > { %v748_v38 = vld [vmem:[#allocation3 + $0x30] sm:$0xff] }
 0x119   : > { %v756_v39 = vadd.f32 %v1917_v30, %v748_v38  ;;  %v746_v40 = vld [vmem:[#allocation3 + $0x20] sm:$0xff] }
 0x11a   : > { %v754_v41 = vadd.f32 %v746_v40, %v727_v32  ;;  %v749_v42 = vld [vmem:[#allocation3 + $0x38] sm:$0xff]  ;;  %v870_v43 = vld [vmem:[#allocation3 + $0x10] sm:$0xff]  ;;  %v2412_v49 = vpop.f32.mrb[20].mxu0 }
 0x11b   : > { %764 = vst.msk [vmem:[#allocation3 + $0x30] sm:$0xff] %vm380_vm13, %v756_v39  ;;  %v757_v44 = vadd.f32 %v1918_v34, %v749_v42  ;;  %v878_v45 = vadd.f32 %v1923_v6, %v870_v43  ;;  %v747_v46 = vld [vmem:[#allocation3 + $0x28] sm:$0xff]  ;;  %v868_v47 = vld [vmem:[#allocation3] sm:$0xff]  ;;  %v2415_v53 = vpop.f32.mrb[21].mxu0 }
 0x11c   : > { %762 = vst.msk [vmem:[#allocation3 + $0x20] sm:$0xff] %vm380_vm13, %v754_v41  ;;  %v755_v50 = vadd.f32 %v747_v46, %v730_v36  ;;  %v876_v51 = vadd.f32 %v868_v47, %v837_v8  ;;  %v871_v52 = vld [vmem:[#allocation3 + $0x18] sm:$0xff]  ;;  %v1933_v48 = vpop.f32.mrb[20].mxu1  ;;  %v2419_v58 = vpop.f32.mrb[22].mxu0 }
 0x11d   : > { %765 = vst.msk [vmem:[#allocation3 + $0x38] sm:$0xff] %vm380_vm13, %v757_v44  ;;  %886 = vst.msk [vmem:[#allocation3 + $0x10] sm:$0xff] %vm380_vm13, %v878_v45  ;;  %v879_v55 = vadd.f32 %v1924_v54, %v871_v52  ;;  %v869_v56 = vld [vmem:[#allocation3 + $0x8] sm:$0xff]  ;;  %v963_v10 = vpop.f32.mrb[21].mxu1  ;;  %v2423_v62 = vpop.f32.mrb[23].mxu0 }
 0x11e   : > { %763 = vst.msk [vmem:[#allocation3 + $0x28] sm:$0xff] %vm380_vm13, %v755_v50  ;;  %884 = vst.msk [vmem:[#allocation3] sm:$0xff] %vm380_vm13, %v876_v51  ;;  %v877_v59 = vadd.f32 %v869_v56, %v840_v13  ;;  %v1934_v60 = vpop.f32.mrb[22].mxu1 }
 0x11f   : > { %887 = vst.msk [vmem:[#allocation3 + $0x18] sm:$0xff] %vm380_vm13, %v879_v55  ;;  %v966_v61 = vpop.f32.mrb[23].mxu1 }
 0x120   : > { %885 = vst.msk [vmem:[#allocation3 + $0x8] sm:$0xff] %vm380_vm13, %v877_v59 }
 0x122   : > { %v874_v63 = vld [vmem:[#allocation3 + $0x30] sm:$0xff]  ;;  %v2427_v1 = vpop.f32.mrb[24].mxu0 }
 0x123   : > { %v882_v0 = vadd.f32 %v1927_v28, %v874_v63  ;;  %v872_v57 = vld [vmem:[#allocation3 + $0x20] sm:$0xff]  ;;  %v2429_v6 = vpop.f32.mrb[25].mxu0 }
 0x124   : > { %v880_v2 = vadd.f32 %v872_v57, %v853_v31  ;;  %v875_v3 = vld [vmem:[#allocation3 + $0x38] sm:$0xff]  ;;  %v996_v4 = vld [vmem:[#allocation3 + $0x10] sm:$0xff]  ;;  %v1937_v5 = vpop.f32.mrb[24].mxu1  ;;  %v2432_v12 = vpop.f32.mrb[26].mxu0 }
 0x125   : > { %890 = vst.msk [vmem:[#allocation3 + $0x30] sm:$0xff] %vm380_vm13, %v882_v0  ;;  %v883_v7 = vadd.f32 %v1928_v33, %v875_v3  ;;  %v1004_v8 = vadd.f32 %v1933_v48, %v996_v4  ;;  %v873_v9 = vld [vmem:[#allocation3 + $0x28] sm:$0xff]  ;;  %v994_v54 = vld [vmem:[#allocation3] sm:$0xff]  ;;  %v979_v11 = vpop.f32.mrb[25].mxu1  ;;  %v2435_v17 = vpop.f32.mrb[27].mxu0 }
 0x126   : > { %888 = vst.msk [vmem:[#allocation3 + $0x20] sm:$0xff] %vm380_vm13, %v880_v2  ;;  %v881_v13 = vadd.f32 %v873_v9, %v856_v35  ;;  %v1002_v14 = vadd.f32 %v994_v54, %v963_v10  ;;  %v997_v15 = vld [vmem:[#allocation3 + $0x18] sm:$0xff]  ;;  %v1938_v16 = vpop.f32.mrb[26].mxu1 }
 0x127   : > { %891 = vst.msk [vmem:[#allocation3 + $0x38] sm:$0xff] %vm380_vm13, %v883_v7  ;;  %1012 = vst.msk [vmem:[#allocation3 + $0x10] sm:$0xff] %vm380_vm13, %v1004_v8  ;;  %v1005_v18 = vadd.f32 %v1934_v60, %v997_v15  ;;  %v995_v19 = vld [vmem:[#allocation3 + $0x8] sm:$0xff]  ;;  %v982_v20 = vpop.f32.mrb[27].mxu1 }
 0x128   : > { %889 = vst.msk [vmem:[#allocation3 + $0x28] sm:$0xff] %vm380_vm13, %v881_v13  ;;  %1010 = vst.msk [vmem:[#allocation3] sm:$0xff] %vm380_vm13, %v1002_v14  ;;  %v1003_v21 = vadd.f32 %v995_v19, %v966_v61  ;;  %v1635_v19 = vpop.permute.xlu0 %1634 }
 0x129   : > { %1013 = vst.msk [vmem:[#allocation3 + $0x18] sm:$0xff] %vm380_vm13, %v1005_v18 }
 0x12a   : > { %1011 = vst.msk [vmem:[#allocation3 + $0x8] sm:$0xff] %vm380_vm13, %v1003_v21  ;;  %v2443_v37 = vpop.f32.mrb[28].mxu0 }
 0x12b   : > { %v2445_v24 = vpop.f32.mrb[29].mxu0 }
 0x12c   : > { %v1000_v22 = vld [vmem:[#allocation3 + $0x30] sm:$0xff]  ;;  %v1953_v23 = vpop.f32.mrb[28].mxu1  ;;  %v2447_v28 = vpop.f32.mrb[30].mxu0 }
 0x12d   : > { %v1008_v25 = vadd.f32 %v1937_v5, %v1000_v22  ;;  %v998_v26 = vld [vmem:[#allocation3 + $0x20] sm:$0xff]  ;;  %v1215_v27 = vpop.f32.mrb[29].mxu1  ;;  %v2449_v33 = vpop.f32.mrb[31].mxu0 }
 0x12e   : > { %v1006_v29 = vadd.f32 %v998_v26, %v979_v11  ;;  %v1001_v30 = vld [vmem:[#allocation3 + $0x38] sm:$0xff]  ;;  %v1122_v31 = vld [vmem:[#allocation3 + $0x10] sm:$0xff]  ;;  %v1954_v32 = vpop.f32.mrb[30].mxu1  ;;  %v1639_v22 = vpop.permute.xlu1 %1638 }
 0x12f   : > { %1016 = vst.msk [vmem:[#allocation3 + $0x30] sm:$0xff] %vm380_vm13, %v1008_v25  ;;  %v1009_v34 = vadd.f32 %v1938_v16, %v1001_v30  ;;  %v1130_v35 = vadd.f32 %v2412_v49, %v1122_v31  ;;  %v999_v36 = vld [vmem:[#allocation3 + $0x28] sm:$0xff]  ;;  %v1120_v38 = vld [vmem:[#allocation3] sm:$0xff]  ;;  %v1218_v39 = vpop.f32.mrb[31].mxu1  ;;  %v1637_v25 = vpop.permute.xlu0 %1636 }
 0x130   : > { %1014 = vst.msk [vmem:[#allocation3 + $0x20] sm:$0xff] %vm380_vm13, %v1006_v29  ;;  %v1007_v40 = vadd.f32 %v999_v36, %v982_v20  ;;  %v1128_v41 = vadd.f32 %v1120_v38, %v2415_v53  ;;  %v1123_v42 = vld [vmem:[#allocation3 + $0x18] sm:$0xff] }
 0x131   : > { %1017 = vst.msk [vmem:[#allocation3 + $0x38] sm:$0xff] %vm380_vm13, %v1009_v34  ;;  %1138 = vst.msk [vmem:[#allocation3 + $0x10] sm:$0xff] %vm380_vm13, %v1130_v35  ;;  %v1131_v43 = vadd.f32 %v2419_v58, %v1123_v42  ;;  %v1121_v44 = vld [vmem:[#allocation3 + $0x8] sm:$0xff] }
 0x132   : > { %1015 = vst.msk [vmem:[#allocation3 + $0x28] sm:$0xff] %vm380_vm13, %v1007_v40  ;;  %1136 = vst.msk [vmem:[#allocation3] sm:$0xff] %vm380_vm13, %v1128_v41  ;;  %v1129_v45 = vadd.f32 %v1121_v44, %v2423_v62  ;;  %v1967_v46 = vpop.f32.mrb[32].mxu0  ;;  %v1641_v31 = vpop.permute.xlu1 %1640 }
 0x133   : > { %1139 = vst.msk [vmem:[#allocation3 + $0x18] sm:$0xff] %vm380_vm13, %v1131_v43  ;;  %v1357_v49 = vpop.f32.mrb[33].mxu0 }
 0x134   : > { %1137 = vst.msk [vmem:[#allocation3 + $0x8] sm:$0xff] %vm380_vm13, %v1129_v45  ;;  %v1957_v47 = vpop.f32.mrb[32].mxu1  ;;  %v2463_v51 = vpop.f32.mrb[34].mxu0 }
 0x135   : > { %v1231_v50 = vpop.f32.mrb[33].mxu1  ;;  %v2465_v53 = vpop.f32.mrb[35].mxu0 }
 0x136   : > { %v1126_v52 = vld [vmem:[#allocation3 + $0x30] sm:$0xff]  ;;  %v1958_v48 = vpop.f32.mrb[34].mxu1  ;;  %v1643_v45 = vpop.permute.xlu0 %1642 }
 0x137   : > { %v1134_v55 = vadd.f32 %v2427_v1, %v1126_v52  ;;  %v1124_v56 = vld [vmem:[#allocation3 + $0x20] sm:$0xff]  ;;  %v1234_v10 = vpop.f32.mrb[35].mxu1 }
 0x138   : > { %v1132_v58 = vadd.f32 %v1124_v56, %v2429_v6  ;;  %v1127_v59 = vld [vmem:[#allocation3 + $0x38] sm:$0xff]  ;;  %v1248_v60 = vld [vmem:[#allocation3 + $0x10] sm:$0xff] }
 0x139   : > { %1142 = vst.msk [vmem:[#allocation3 + $0x30] sm:$0xff] %vm380_vm13, %v1134_v55  ;;  %v1135_v62 = vadd.f32 %v2432_v12, %v1127_v59  ;;  %v1256_v61 = vadd.f32 %v1953_v23, %v1248_v60  ;;  %v1125_v63 = vld [vmem:[#allocation3 + $0x28] sm:$0xff]  ;;  %v1246_v0 = vld [vmem:[#allocation3] sm:$0xff] }
 0x13a   : > { %1140 = vst.msk [vmem:[#allocation3 + $0x20] sm:$0xff] %vm380_vm13, %v1132_v58  ;;  %v1133_v57 = vadd.f32 %v1125_v63, %v2435_v17  ;;  %v1254_v2 = vadd.f32 %v1246_v0, %v1215_v27  ;;  %v1249_v3 = vld [vmem:[#allocation3 + $0x18] sm:$0xff]  ;;  %v1647_v58 = vpop.permute.xlu0 %1646 }
 0x13b   : > { %1143 = vst.msk [vmem:[#allocation3 + $0x38] sm:$0xff] %vm380_vm13, %v1135_v62  ;;  %1264 = vst.msk [vmem:[#allocation3 + $0x10] sm:$0xff] %vm380_vm13, %v1256_v61  ;;  %v1257_v1 = vadd.f32 %v1954_v32, %v1249_v3  ;;  %v1247_v4 = vld [vmem:[#allocation3 + $0x8] sm:$0xff] }
 0x13c   : > { %1141 = vst.msk [vmem:[#allocation3 + $0x28] sm:$0xff] %vm380_vm13, %v1133_v57  ;;  %1262 = vst.msk [vmem:[#allocation3] sm:$0xff] %vm380_vm13, %v1254_v2  ;;  %v1255_v5 = vadd.f32 %v1247_v4, %v1218_v39 }
 0x13d   : > { %1265 = vst.msk [vmem:[#allocation3 + $0x18] sm:$0xff] %vm380_vm13, %v1257_v1 }
 0x13e   : > { %1263 = vst.msk [vmem:[#allocation3 + $0x8] sm:$0xff] %vm380_vm13, %v1255_v5 }
 0x140   : > { %v1252_v6 = vld [vmem:[#allocation3 + $0x30] sm:$0xff] }
 0x141   : > { %v1260_v7 = vadd.f32 %v1957_v47, %v1252_v6  ;;  %v1250_v8 = vld [vmem:[#allocation3 + $0x20] sm:$0xff] }
 0x142   : > { %v1258_v9 = vadd.f32 %v1250_v8, %v1231_v50  ;;  %v1253_v54 = vld [vmem:[#allocation3 + $0x38] sm:$0xff]  ;;  %v1374_v11 = vld [vmem:[#allocation3 + $0x10] sm:$0xff] }
 0x143   : > { %1268 = vst.msk [vmem:[#allocation3 + $0x30] sm:$0xff] %vm380_vm13, %v1260_v7  ;;  %v1261_v12 = vadd.f32 %v1958_v48, %v1253_v54  ;;  %v1382_v13 = vadd.f32 %v2443_v37, %v1374_v11  ;;  %v1251_v14 = vld [vmem:[#allocation3 + $0x28] sm:$0xff]  ;;  %v1372_v15 = vld [vmem:[#allocation3] sm:$0xff] }
 0x144   : > { %1266 = vst.msk [vmem:[#allocation3 + $0x20] sm:$0xff] %vm380_vm13, %v1258_v9  ;;  %v1259_v16 = vadd.f32 %v1251_v14, %v1234_v10  ;;  %v1380_v17 = vadd.f32 %v1372_v15, %v2445_v24  ;;  %v1375_v18 = vld [vmem:[#allocation3 + $0x18] sm:$0xff]  ;;  %v1829_v24 = vld [vmem:[%s2535_s2] ss:$0 sm:$0xff] }
 0x145   : > { %1269 = vst.msk [vmem:[#allocation3 + $0x38] sm:$0xff] %vm380_vm13, %v1261_v12  ;;  %1390 = vst.msk [vmem:[#allocation3 + $0x10] sm:$0xff] %vm380_vm13, %v1382_v13  ;;  %v1383_v20 = vadd.f32 %v2447_v28, %v1375_v18  ;;  %v1373_v21 = vld [vmem:[#allocation3 + $0x8] sm:$0xff] }
 0x146   : > { %1267 = vst.msk [vmem:[#allocation3 + $0x28] sm:$0xff] %vm380_vm13, %v1259_v16  ;;  %1388 = vst.msk [vmem:[#allocation3] sm:$0xff] %vm380_vm13, %v1380_v17  ;;  %v1381_v37 = vadd.f32 %v1373_v21, %v2449_v33 }
 0x147   : > { %1391 = vst.msk [vmem:[#allocation3 + $0x18] sm:$0xff] %vm380_vm13, %v1383_v20 }
 0x148   : > { %1389 = vst.msk [vmem:[#allocation3 + $0x8] sm:$0xff] %vm380_vm13, %v1381_v37 }
 0x14a   : > { %v1378_v23 = vld [vmem:[#allocation3 + $0x30] sm:$0xff] }
 0x14b   : > { %v1386_v26 = vadd.f32 %v1967_v46, %v1378_v23  ;;  %v1376_v27 = vld [vmem:[#allocation3 + $0x20] sm:$0xff] }
 0x14c   : > { %v1384_v28 = vadd.f32 %v1376_v27, %v1357_v49  ;;  %v1379_v29 = vld [vmem:[#allocation3 + $0x38] sm:$0xff]  ;;  %v1398_v30 = vld [vmem:[#allocation3 + $0x10] sm:$0xff] }
 0x14d   : > { %1394 = vst.msk [vmem:[#allocation3 + $0x30] sm:$0xff] %vm380_vm13, %v1386_v26  ;;  %v1387_v32 = vadd.f32 %v2463_v51, %v1379_v29  ;;  %v1377_v33 = vld [vmem:[#allocation3 + $0x28] sm:$0xff]  ;;  %v1396_v34 = vld [vmem:[#allocation3] sm:$0xff]  ;;  %v1413_v35 = vadd.f32 %v1829_v24, %v1398_v30  ;;  %v1645_v51 = vpop.permute.xlu1 %1644 }
 0x14e   : > { %1392 = vst.msk [vmem:[#allocation3 + $0x20] sm:$0xff] %vm380_vm13, %v1384_v28  ;;  %v1385_v36 = vadd.f32 %v1377_v33, %v2465_v53  ;;  %v1411_v38 = vadd.f32 %v1829_v24, %v1396_v34  ;;  %v1399_v39 = vld [vmem:[#allocation3 + $0x18] sm:$0xff] }
 0x14f   : > { %1395 = vst.msk [vmem:[#allocation3 + $0x38] sm:$0xff] %vm380_vm13, %v1387_v32  ;;  %v1421_v40 = vmax.f32 %v1413_v35, 0.0  ;;  %v1397_v41 = vld [vmem:[#allocation3 + $0x8] sm:$0xff]  ;;  %v1414_v42 = vadd.f32 %v1829_v24, %v1399_v39 }
 0x150   : > { %1393 = vst.msk [vmem:[#allocation3 + $0x28] sm:$0xff] %vm380_vm13, %v1385_v36  ;;  %v1419_v43 = vmax.f32 %v1411_v38, 0.0  ;;  %v1412_v44 = vadd.f32 %v1829_v24, %v1397_v41 }
 0x151   : > { %v1660_v46 = vsel %vm380_vm13, %v1421_v40, %v1639_v22  ;;  %v1422_v47 = vmax.f32 %v1414_v42, 0.0  ;;  %v1649_v57 = vpop.permute.xlu1 %1648 }
 0x152   : > { %v1658_v49 = vsel %vm380_vm13, %v1419_v43, %v1635_v19  ;;  %1669 = vst.msk [vmem:[%s2503_s13 + $0x10] sm:$0xff] %vm1666_vm14, %v1660_v46  ;;  %v1420_v50 = vmax.f32 %v1412_v44, 0.0 }
 0x153   : > { %1667 = vst.msk [vmem:[%s2503_s13] sm:$0xff] %vm1666_vm14, %v1658_v49  ;;  %v1661_v52 = vsel %vm380_vm13, %v1422_v47, %v1641_v31 }
 0x154   : > { %v1659_v48 = vsel %vm380_vm13, %v1420_v50, %v1637_v25  ;;  %1670 = vst.msk [vmem:[%s2503_s13 + $0x18] sm:$0xff] %vm1666_vm14, %v1661_v52  ;;  %v1402_v53 = vld [vmem:[#allocation3 + $0x30] sm:$0xff] }
 0x155   : > { %1668 = vst.msk [vmem:[%s2503_s13 + $0x8] sm:$0xff] %vm1666_vm14, %v1659_v48  ;;  %v1400_v55 = vld [vmem:[#allocation3 + $0x20] sm:$0xff]  ;;  %v1417_v56 = vadd.f32 %v1829_v24, %v1402_v53 }
 0x156   : > { %v1415_v10 = vadd.f32 %v1829_v24, %v1400_v55  ;;  %v1403_v59 = vld [vmem:[#allocation3 + $0x38] sm:$0xff] }
 0x157   : > { %v1401_v60 = vld [vmem:[#allocation3 + $0x28] sm:$0xff]  ;;  %v1425_v62 = vmax.f32 %v1417_v56, 0.0  ;;  %v1418_v61 = vadd.f32 %v1829_v24, %v1403_v59 }
 0x158   : > { %v1423_v63 = vmax.f32 %v1415_v10, 0.0  ;;  %v1416_v0 = vadd.f32 %v1829_v24, %v1401_v60 }
 0x159   : > { %v1664_v2 = vsel %vm380_vm13, %v1425_v62, %v1647_v58  ;;  %v1426_v3 = vmax.f32 %v1418_v61, 0.0 }
 0x15a   : > { %v1662_v1 = vsel %vm380_vm13, %v1423_v63, %v1643_v45  ;;  %v1424_v4 = vmax.f32 %v1416_v0, 0.0  ;;  %1673 = vst.msk [vmem:[%s2503_s13 + $0x30] sm:$0xff] %vm1666_vm14, %v1664_v2 }
 0x15b   : > { %1671 = vst.msk [vmem:[%s2503_s13 + $0x20] sm:$0xff] %vm1666_vm14, %v1662_v1  ;;  %v1665_v5 = vsel %vm380_vm13, %v1426_v3, %v1649_v57 }
 0x15c   : > { %v1663_v6 = vsel %vm380_vm13, %v1424_v4, %v1645_v51  ;;  %1674 = vst.msk [vmem:[%s2503_s13 + $0x38] sm:$0xff] %vm1666_vm14, %v1665_v5 }
 0x15d   : > { %1672 = vst.msk [vmem:[%s2503_s13 + $0x28] sm:$0xff] %vm1666_vm14, %v1663_v6 }
 0x15e PF: > { %s13_s12 = sadd.s32 1, %s1997_s12  }
 0x15f   : > { %p10_p4 = scmp.ge.s32.totalorder %s13_s12, 4  }
 0x161   :  { %12 = sbr.rel (!%p10_p4) target bundleno = 1 (0x1), region = 142 }

</bundles_post_ra>
